<compile_context>
chip_gen: v5e
topology: v5e:2x2
jax: 0.10.0
libtpu: 0.0.40
codegen_flags: <defaults>
</compile_context>

<pallas_src>
import functools

import jax
import jax.numpy as jnp
from jax.experimental import pallas as pl
from jax.experimental.pallas import tpu as pltpu

F_IN = 5          # e, pt, eta, phi, m
HIDDEN = 1024
F_OUT = 3

F_PAD = 128       # lane-dense padding of the 5-wide input features
OUT_PAD = 128     # lane-dense padding of the 3-wide output features


def _round_up(x, m):
    return (x + m - 1) // m * m


def _pick_row_tile(n_pad, tm):
    """Largest multiple of 128 that is <= tm and divides n_pad (n_pad % 128 == 0)."""
    t = max(128, min((tm // 128) * 128, n_pad))
    while n_pad % t:
        t -= 128
    return t


def _vmem_limit_bytes(n_pad, tm):
    a_resident = n_pad * n_pad * 2                       # single-buffered (manual DMA)
    z_scratch = n_pad * OUT_PAD * 2
    residents = 2 * (n_pad * F_PAD * 2 + F_PAD * HIDDEN * 2 + HIDDEN * 4
                     + HIDDEN * OUT_PAD * 2 + OUT_PAD * 4 + n_pad * OUT_PAD * 4)
    out_bufs = 2 * tm * OUT_PAD * 4
    working = 2 * tm * HIDDEN * 4                        # [tm, 1024] f32 hidden headroom
    est = a_resident + z_scratch + residents + out_bufs + working
    # 64 MiB cap is safe on every generation (v7x physical VMEM is 64 MiB);
    # v5e/v6e can be raised toward ~96 MiB for larger graphs.
    return int(min(64 * 1024 * 1024, max(32 * 1024 * 1024, 2 * est)))


# ------------------------------ fused Pallas kernel ------------------------------


def _fused_gcn_kernel(a_hbm, xs_ref, w1_ref, b1_ref, w2_ref, b2_ref, d_ref,
                      o_ref, a_vmem, z_vmem, copy_sem, *, tm):
    p = pl.program_id(0)                       # 0: layer 1 (fill Z), 1: layer 2 (A@Z)
    i = pl.program_id(1)                       # row tile
    row = pl.multiple_of(i * tm, tm)

    # One-time: bring the exact bf16 (A + I) adjacency from HBM into a single
    # VMEM-resident copy (read from HBM exactly once for both passes).
    @pl.when((p == 0) & (i == 0))
    def _():
        cp = pltpu.make_async_copy(a_hbm, a_vmem, copy_sem)
        cp.start()
        cp.wait()

    a_tile = a_vmem[pl.ds(row, tm), :]         # [tm, n_pad] bf16 (0/1/2, exact)
    d_tile = d_ref[pl.ds(row, tm), :]          # [tm, 128]   f32  d^{-1/2} (lane-bcast)

    @pl.when(p == 0)
    def _():
        # A_hat @ X == d * (A @ (d * X)); X rows were pre-scaled by d in the wrapper.
        ax = jnp.dot(a_tile, xs_ref[...], preferred_element_type=jnp.float32)
        ax = ax * d_tile                                            # [tm, F_PAD]
        h = jnp.dot(ax.astype(jnp.bfloat16), w1_ref[...],
                    preferred_element_type=jnp.float32)             # [tm, HIDDEN]
        h = jnp.maximum(h + b1_ref[...], 0.0)                       # fused bias + ReLU
        z = jnp.dot(h.astype(jnp.bfloat16), w2_ref[...],
                    preferred_element_type=jnp.float32)             # [tm, OUT_PAD]
        # Pre-scale rows by d for the second propagation and park in VMEM scratch;
        # neither the [tm, HIDDEN] hidden nor the Z slab ever touches HBM.
        z_vmem[pl.ds(row, tm), :] = (z * d_tile).astype(z_vmem.dtype)

    @pl.when(p == 1)
    def _():
        acc = jnp.dot(a_tile, z_vmem[...], preferred_element_type=jnp.float32)
        o_ref[...] = (acc * d_tile + b2_ref[...]).astype(o_ref.dtype)


# --------------------------------- forward pass ----------------------------------


@functools.partial(jax.jit, static_argnames=("tm",))
def jet_tagging_gnn_forward(e, pt, eta, phi, m, edge_index, params, tm=128):
    """JetTaggingGNN.forward with a dense (A+I) adjacency, fused into one kernel."""
    x = jnp.concatenate([e, pt, eta, phi, m], axis=1).astype(jnp.float32)  # [N, 5]
    n = x.shape[0]

    # Raw (A + I) built directly in bf16 (entries are small integers -> exact).
    src = edge_index[0]
    dst = edge_index[1]
    adj = jnp.zeros((n, n), jnp.bfloat16).at[dst, src].set(1.0)
    adj = adj + jnp.eye(n, dtype=jnp.bfloat16)
    deg = jnp.sum(adj, axis=1, dtype=jnp.float32)            # f32 accumulation
    d_inv_sqrt = jax.lax.rsqrt(jnp.maximum(deg, 1.0e-12))    # [N] f32

    # Pad N to a multiple of 128 (decoupled from the row tile size).
    n_pad = _round_up(max(n, 1), 128)
    tm_eff = _pick_row_tile(n_pad, tm)
    n_tiles = n_pad // tm_eff

    a_p = jnp.zeros((n_pad, n_pad), jnp.bfloat16).at[:n, :n].set(adj)
    xs = (x * d_inv_sqrt[:, None]).astype(jnp.bfloat16)      # pre-scaled X rows
    xs_p = jnp.zeros((n_pad, F_PAD), jnp.bfloat16).at[:n, :F_IN].set(xs)
    d_p = jnp.zeros((n_pad,), jnp.float32).at[:n].set(d_inv_sqrt)
    d_b = jnp.broadcast_to(d_p[:, None], (n_pad, OUT_PAD))   # lane-broadcast f32

    w1_p = jnp.zeros((F_PAD, HIDDEN), jnp.bfloat16).at[:F_IN, :].set(
        params["w1"].astype(jnp.bfloat16))
    w2_p = jnp.zeros((HIDDEN, OUT_PAD), jnp.bfloat16).at[:, :F_OUT].set(
        params["w2"].astype(jnp.bfloat16))
    b1_p = params["b1"].reshape(1, HIDDEN).astype(jnp.float32)
    b2_p = jnp.zeros((1, OUT_PAD), jnp.float32).at[0, :F_OUT].set(params["b2"])

    kernel = functools.partial(_fused_gcn_kernel, tm=tm_eff)

    out = pl.pallas_call(
        kernel,
        out_shape=jax.ShapeDtypeStruct((n_pad, OUT_PAD), jnp.float32),
        grid_spec=pltpu.PrefetchScalarGridSpec(
            num_scalar_prefetch=0,
            grid=(2, n_tiles),                                # (pass, row tile)
            in_specs=[
                pl.BlockSpec(memory_space=pl.ANY),            # (A+I) in HBM, manual DMA
                pl.BlockSpec((n_pad, F_PAD), lambda p, i: (0, 0)),     # Xs (resident)
                pl.BlockSpec((F_PAD, HIDDEN), lambda p, i: (0, 0)),    # W1 (resident)
                pl.BlockSpec((1, HIDDEN), lambda p, i: (0, 0)),        # b1 (resident)
                pl.BlockSpec((HIDDEN, OUT_PAD), lambda p, i: (0, 0)),  # W2 (resident)
                pl.BlockSpec((1, OUT_PAD), lambda p, i: (0, 0)),       # b2 (resident)
                pl.BlockSpec((n_pad, OUT_PAD), lambda p, i: (0, 0)),   # d^{-1/2} rows
            ],
            out_specs=pl.BlockSpec((tm_eff, OUT_PAD), lambda p, i: (i, 0)),
            scratch_shapes=[
                pltpu.VMEM((n_pad, n_pad), jnp.bfloat16),     # resident A (single copy)
                pltpu.VMEM((n_pad, OUT_PAD), jnp.bfloat16),   # Z (layer-1 output)
                pltpu.SemaphoreType.DMA,                      # A copy semaphore
            ],
        ),
        compiler_params=pltpu.CompilerParams(
            # Pass axis carries the Z dependency; the row axis shares the resident
            # A/Z VMEM scratch, so keep both sequential on one core.
            dimension_semantics=("arbitrary", "arbitrary"),
            vmem_limit_bytes=_vmem_limit_bytes(n_pad, tm_eff),
        ),
    )(a_p, xs_p, w1_p, b1_p, w2_p, b2_p, d_b)

    return out[:n, :F_OUT]


# ------------------------------- plain-JAX reference ------------------------------


def _reference_forward(e, pt, eta, phi, m, edge_index, params):
    """Plain-JAX f32 reference matching the PyTorch module."""
    x = jnp.concatenate([e, pt, eta, phi, m], axis=1).astype(jnp.float32)
    n = x.shape[0]
    src, dst = edge_index[0], edge_index[1]
    adj = jnp.zeros((n, n), jnp.float32).at[dst, src].set(1.0)
    adj = adj + jnp.eye(n, dtype=jnp.float32)
    deg = jnp.sum(adj, axis=1)
    d_inv_sqrt = 1.0 / jnp.sqrt(jnp.maximum(deg, 1.0e-12))
    a_hat = adj * d_inv_sqrt[:, None] * d_inv_sqrt[None, :]
    h = jnp.maximum(a_hat @ (x @ params["w1"]) + params["b1"], 0.0)
    return a_hat @ (h @ params["w2"]) + params["b2"]


if __name__ == "__main__":
    key = jax.random.PRNGKey(0)
    n_nodes, n_edges = 200, 1200
    keys = jax.random.split(key, 10)

    e = jax.random.normal(keys[0], (n_nodes, 1), jnp.float32)
    pt = jax.random.normal(keys[1], (n_nodes, 1), jnp.float32)
    eta = jax.random.normal(keys[2], (n_nodes, 1), jnp.float32)
    phi = jax.random.normal(keys[3], (n_nodes, 1), jnp.float32)
    m = jax.random.normal(keys[4], (n_nodes, 1), jnp.float32)

    src = jax.random.randint(keys[5], (n_edges,), 0, n_nodes, jnp.int32)
    dst = jax.random.randint(keys[6], (n_edges,), 0, n_nodes, jnp.int32)
    edge_index = jnp.stack(
        [jnp.concatenate([src, dst]), jnp.concatenate([dst, src])], axis=0
    )  # symmetric graph, shape [2, 2*n_edges]

    params = {
        "w1": jax.random.normal(keys[7], (F_IN, HIDDEN), jnp.float32)
        / jnp.sqrt(float(F_IN)),
        "b1": 0.1 * jax.random.normal(keys[8], (HIDDEN,), jnp.float32),
        "w2": jax.random.normal(keys[9], (HIDDEN, F_OUT), jnp.float32)
        / jnp.sqrt(float(HIDDEN)),
        "b2": 0.1 * jax.random.normal(jax.random.PRNGKey(1), (F_OUT,), jnp.float32),
    }

    out = jet_tagging_gnn_forward(e, pt, eta, phi, m, edge_index, params, tm=128)
    out = jax.block_until_ready(out)

    ref = _reference_forward(e, pt, eta, phi, m, edge_index, params)
    assert out.shape == (n_nodes, F_OUT)
    assert bool(jnp.all(jnp.isfinite(out)))
    assert bool(jnp.allclose(out, ref, rtol=1e-1, atol=1e-1)), (
        "mismatch vs reference: max abs err = "
        f"{float(jnp.max(jnp.abs(out - ref)))}"
    )
    print("KERNEL_OK")
</pallas_src>

<mosaic_0001>
module attributes {stable_mosaic.version = 11 : i64} {
  func.func @_fused_gcn_kernel(%arg0: i32, %arg1: i32, %arg2: memref<256x256xbf16, #tpu.memory_space<any>>, %arg3: memref<256x128xbf16, #tpu.memory_space<vmem>>, %arg4: memref<128x1024xbf16, #tpu.memory_space<vmem>>, %arg5: memref<1x1024xf32, #tpu.memory_space<vmem>>, %arg6: memref<1024x128xbf16, #tpu.memory_space<vmem>>, %arg7: memref<1x128xf32, #tpu.memory_space<vmem>>, %arg8: memref<256x128xf32, #tpu.memory_space<vmem>>, %arg9: memref<128x128xf32, #tpu.memory_space<vmem>>, %arg10: memref<256x256xbf16, #tpu.memory_space<vmem>>, %arg11: memref<256x128xbf16, #tpu.memory_space<vmem>>, %arg12: memref<!tpu.dma_semaphore, #tpu.memory_space<semaphore_mem>>) attributes {dimension_semantics = [#tpu.dimension_semantics<arbitrary>, #tpu.dimension_semantics<arbitrary>], iteration_bounds = array<i64: 2, 2>, scalar_prefetch = 0 : i64, scratch_operands = 3 : i64, tpu.core_type = #tpu.core_type<tc>, window_params = [{}, {pipeline_mode = #tpu.pipeline_mode<synchronous>, transform_indices = @transform_1, window_bounds = array<i64: 256, 128>}, {pipeline_mode = #tpu.pipeline_mode<synchronous>, transform_indices = @transform_2, window_bounds = array<i64: 128, 1024>}, {pipeline_mode = #tpu.pipeline_mode<synchronous>, transform_indices = @transform_3, window_bounds = array<i64: 1, 1024>}, {pipeline_mode = #tpu.pipeline_mode<synchronous>, transform_indices = @transform_4, window_bounds = array<i64: 1024, 128>}, {pipeline_mode = #tpu.pipeline_mode<synchronous>, transform_indices = @transform_5, window_bounds = array<i64: 1, 128>}, {pipeline_mode = #tpu.pipeline_mode<synchronous>, transform_indices = @transform_6, window_bounds = array<i64: 256, 128>}, {transform_indices = @transform_7, window_bounds = array<i64: 128, 128>}]} {
    %c128_i32 = arith.constant 128 : i32
    %0 = arith.muli %arg1, %c128_i32 : i32
    %1 = tpu.assume_multiple %0, 128 : i32
    %c0_i32 = arith.constant 0 : i32
    %2 = arith.cmpi eq, %arg0, %c0_i32 : i32
    %c0_i32_0 = arith.constant 0 : i32
    %3 = arith.cmpi eq, %arg1, %c0_i32_0 : i32
    %4 = arith.andi %2, %3 : i1
    %5 = arith.extui %4 : i1 to i32
    %c0_i32_1 = arith.constant 0 : i32
    %6 = arith.cmpi ne, %5, %c0_i32_1 : i32
    scf.if %6 {
      tpu.enqueue_dma source(%arg2 : memref<256x256xbf16, #tpu.memory_space<any>>) target(%arg10 : memref<256x256xbf16, #tpu.memory_space<vmem>>) target_semaphore(%arg12 : memref<!tpu.dma_semaphore, #tpu.memory_space<semaphore_mem>>)
      tpu.wait_dma2 semaphore(%arg12 : memref<!tpu.dma_semaphore, #tpu.memory_space<semaphore_mem>>) src(%arg2 : memref<256x256xbf16, #tpu.memory_space<any>>) dst(%arg10 : memref<256x256xbf16, #tpu.memory_space<vmem>>)
    } else {
    }
    %7 = arith.index_cast %1 : i32 to index
    %c0 = arith.constant 0 : index
    %8 = vector.load %arg10[%7, %c0] : memref<256x256xbf16, #tpu.memory_space<vmem>>, vector<128x256xbf16>
    %9 = arith.index_cast %1 : i32 to index
    %c0_2 = arith.constant 0 : index
    %10 = vector.load %arg8[%9, %c0_2] : memref<256x128xf32, #tpu.memory_space<vmem>>, vector<128x128xf32>
    %c0_i32_3 = arith.constant 0 : i32
    %11 = arith.cmpi eq, %arg0, %c0_i32_3 : i32
    %12 = arith.extui %11 : i1 to i32
    %c0_i32_4 = arith.constant 0 : i32
    %13 = arith.cmpi ne, %12, %c0_i32_4 : i32
    scf.if %13 {
      %c0_6 = arith.constant 0 : index
      %c0_7 = arith.constant 0 : index
      %17 = vector.load %arg3[%c0_6, %c0_7] : memref<256x128xbf16, #tpu.memory_space<vmem>>, vector<256x128xbf16>
      %cst = arith.constant dense<0.000000e+00> : vector<128x128xf32>
      %18 = tpu.matmul %8, %17, %cst {dimension_numbers = #tpu.dot_dimension_numbers<[1], [0], [0], [1], [0, 0, 1, 1], [], []>} : vector<128x256xbf16>, vector<256x128xbf16>, vector<128x128xf32> -> vector<128x128xf32>
      %19 = arith.mulf %18, %10 : vector<128x128xf32>
      %20 = arith.truncf %19 : vector<128x128xf32> to vector<128x128xbf16>
      %c0_8 = arith.constant 0 : index
      %c0_9 = arith.constant 0 : index
      %21 = vector.load %arg4[%c0_8, %c0_9] : memref<128x1024xbf16, #tpu.memory_space<vmem>>, vector<128x1024xbf16>
      %cst_10 = arith.constant dense<0.000000e+00> : vector<128x1024xf32>
      %22 = tpu.matmul %20, %21, %cst_10 {dimension_numbers = #tpu.dot_dimension_numbers<[1], [0], [0], [1], [0, 0, 1, 1], [], []>} : vector<128x128xbf16>, vector<128x1024xbf16>, vector<128x1024xf32> -> vector<128x1024xf32>
      %c0_11 = arith.constant 0 : index
      %c0_12 = arith.constant 0 : index
      %23 = vector.load %arg5[%c0_11, %c0_12] : memref<1x1024xf32, #tpu.memory_space<vmem>>, vector<1x1024xf32>
      %24 = vector.broadcast %23 : vector<1x1024xf32> to vector<128x1024xf32>
      %25 = arith.addf %22, %24 : vector<128x1024xf32>
      %cst_13 = arith.constant 0.000000e+00 : f32
      %26 = vector.broadcast %cst_13 : f32 to vector<128x1024xf32>
      %27 = arith.maximumf %25, %26 : vector<128x1024xf32>
      %28 = arith.truncf %27 : vector<128x1024xf32> to vector<128x1024xbf16>
      %c0_14 = arith.constant 0 : index
      %c0_15 = arith.constant 0 : index
      %29 = vector.load %arg6[%c0_14, %c0_15] : memref<1024x128xbf16, #tpu.memory_space<vmem>>, vector<1024x128xbf16>
      %cst_16 = arith.constant dense<0.000000e+00> : vector<128x128xf32>
      %30 = tpu.matmul %28, %29, %cst_16 {dimension_numbers = #tpu.dot_dimension_numbers<[1], [0], [0], [1], [0, 0, 1, 1], [], []>} : vector<128x1024xbf16>, vector<1024x128xbf16>, vector<128x128xf32> -> vector<128x128xf32>
      %31 = arith.mulf %30, %10 : vector<128x128xf32>
      %32 = arith.truncf %31 : vector<128x128xf32> to vector<128x128xbf16>
      %33 = arith.index_cast %1 : i32 to index
      %c0_17 = arith.constant 0 : index
      %34 = vector.load %arg11[%33, %c0_17] : memref<256x128xbf16, #tpu.memory_space<vmem>>, vector<128x128xbf16>
      tpu.vector_store %arg11[%33, %c0_17], %32 {strides = array<i32>} : memref<256x128xbf16, #tpu.memory_space<vmem>>, vector<128x128xbf16>,
    } else {
    }
    %c1_i32 = arith.constant 1 : i32
    %14 = arith.cmpi eq, %arg0, %c1_i32 : i32
    %15 = arith.extui %14 : i1 to i32
    %c0_i32_5 = arith.constant 0 : i32
    %16 = arith.cmpi ne, %15, %c0_i32_5 : i32
    scf.if %16 {
      %c0_6 = arith.constant 0 : index
      %c0_7 = arith.constant 0 : index
      %17 = vector.load %arg11[%c0_6, %c0_7] : memref<256x128xbf16, #tpu.memory_space<vmem>>, vector<256x128xbf16>
      %cst = arith.constant dense<0.000000e+00> : vector<128x128xf32>
      %18 = tpu.matmul %8, %17, %cst {dimension_numbers = #tpu.dot_dimension_numbers<[1], [0], [0], [1], [0, 0, 1, 1], [], []>} : vector<128x256xbf16>, vector<256x128xbf16>, vector<128x128xf32> -> vector<128x128xf32>
      %19 = arith.mulf %18, %10 : vector<128x128xf32>
      %c0_8 = arith.constant 0 : index
      %c0_9 = arith.constant 0 : index
      %20 = vector.load %arg7[%c0_8, %c0_9] : memref<1x128xf32, #tpu.memory_space<vmem>>, vector<1x128xf32>
      %21 = vector.broadcast %20 : vector<1x128xf32> to vector<128x128xf32>
      %22 = arith.addf %19, %21 : vector<128x128xf32>
      %c0_10 = arith.constant 0 : index
      %c0_11 = arith.constant 0 : index
      %23 = vector.load %arg9[%c0_10, %c0_11] : memref<128x128xf32, #tpu.memory_space<vmem>>, vector<128x128xf32>
      tpu.vector_store %arg9[%c0_10, %c0_11], %22 {strides = array<i32>} : memref<128x128xf32, #tpu.memory_space<vmem>>, vector<128x128xf32>,
    } else {
    }
    return
  }
  func.func @transform_1(%arg0: i32, %arg1: i32) -> (i32, i32) {
    %c0_i32 = arith.constant 0 : i32
    %c0_i32_0 = arith.constant 0 : i32
    %c0_i32_1 = arith.constant 0 : i32
    return %c0_i32, %c0_i32_0 : i32, i32
  }
  func.func @transform_2(%arg0: i32, %arg1: i32) -> (i32, i32) {
    %c0_i32 = arith.constant 0 : i32
    %c0_i32_0 = arith.constant 0 : i32
    %c0_i32_1 = arith.constant 0 : i32
    return %c0_i32, %c0_i32_0 : i32, i32
  }
  func.func @transform_3(%arg0: i32, %arg1: i32) -> (i32, i32) {
    %c0_i32 = arith.constant 0 : i32
    %c0_i32_0 = arith.constant 0 : i32
    %c0_i32_1 = arith.constant 0 : i32
    return %c0_i32, %c0_i32_0 : i32, i32
  }
  func.func @transform_4(%arg0: i32, %arg1: i32) -> (i32, i32) {
    %c0_i32 = arith.constant 0 : i32
    %c0_i32_0 = arith.constant 0 : i32
    %c0_i32_1 = arith.constant 0 : i32
    return %c0_i32, %c0_i32_0 : i32, i32
  }
  func.func @transform_5(%arg0: i32, %arg1: i32) -> (i32, i32) {
    %c0_i32 = arith.constant 0 : i32
    %c0_i32_0 = arith.constant 0 : i32
    %c0_i32_1 = arith.constant 0 : i32
    return %c0_i32, %c0_i32_0 : i32, i32
  }
  func.func @transform_6(%arg0: i32, %arg1: i32) -> (i32, i32) {
    %c0_i32 = arith.constant 0 : i32
    %c0_i32_0 = arith.constant 0 : i32
    %c0_i32_1 = arith.constant 0 : i32
    return %c0_i32, %c0_i32_0 : i32, i32
  }
  func.func @transform_7(%arg0: i32, %arg1: i32) -> (i32, i32) {
    %c0_i32 = arith.constant 0 : i32
    %c0_i32_0 = arith.constant 0 : i32
    return %arg1, %c0_i32 : i32, i32
  }
}

</mosaic_0001>

<bundles_post_ra>
// kernel: jet_tagging_gnn_forward.1
= control target key start
LH: loop header
LB: loop body
LE: loop exit
PB: predicated region body
PF: predicated region fallthrough
CT: control target
= control target key end

     0   :  { %s4260_s24 = smov 0   ;;  %s4262_s25 = smov 0   ;;  %s5907_s0 = inlined_call_operand.vmem [shape: bf16[256,256], index: 0, kind: input, shape index: {}]   ;;  %s5908_s1 = inlined_call_operand.vmem [shape: bf16[256,128], index: 1, kind: input, shape index: {}]   ;;  %s5909_s2 = inlined_call_operand.vmem [shape: bf16[128,1024], index: 2, kind: input, shape index: {}]   ;;  %s5910_s3 = inlined_call_operand.vmem [shape: f32[1,1024], index: 3, kind: input, shape index: {}]   ;;  %s5911_s4 = inlined_call_operand.vmem [shape: bf16[1024,128], index: 4, kind: input, shape index: {}]   ;;  %s5912_s5 = inlined_call_operand.vmem [shape: f32[1,128], index: 5, kind: input, shape index: {}]   ;;  %s5913_s6 = inlined_call_operand.vmem [shape: f32[256,128], index: 6, kind: input, shape index: {}]   ;;  %s5914_s7 = inlined_call_operand.vmem [shape: f32[256,128], index: 7, kind: output, shape index: {}]  }
   0x1   :  { %s4264_s26 = smov 0   ;;  %s4266_s27 = smov 0  }
   0x2   :  { %s4268_s28 = smov 0  }
   0x3 LB: > { %s26_s29 = sadd.s32 1, %s4210_s26  ;;  %s29_s30 = sadd.s32 1, %s4214_s27  ;;  %s4218_s28 = sphi %s4268_s28, %s17_s28   ;;  %s4214_s27 = sphi %s4266_s27, %s6002_s27   ;;  %s4210_s26 = sphi %s4264_s26, %s6001_s26   ;;  %s4206_s25 = sphi %s4262_s25, %s6000_s25   ;;  %s4202_s24 = sphi %s4260_s24, %s5999_s24  }
   0x4   : > { %p27_p0 = scmp.ge.s32.totalorder %s26_s29, 2  ;;  %p3085_p1 = scmp.ge.s32.totalorder %s4218_s28, 1 }
   0x5   : > { %p215_p2 = scmp.lt.s32.totalorder %s4218_s28, 5 }
   0x6   : > { %s6004_s29 = smov (%p27_p0, %s26_s29), 0  ;;  %s6006_s30 = smov (!%p27_p0, %s29_s30), %s4214_s27 }
   0x7   : > { %p216_p3 = pnand %p3085_p1, %p215_p2  ;;  %p31_p4 = scmp.ge.s32.totalorder %s6006_s30, 2 }
   0x9   : > { %s6008_s30 = smov (%p31_p4, %s6006_s30), 0  ;;  %219 = sbr.rel (%p216_p3) target bundleno = 1159 (0x487), region = 44 }
   0xe   : > { %s3086_s8 = sshll.u32 %s4202_s24, 4  ;;  %s4292_s9 = sshll.u32 %s4202_s24, 7 }
   0xf   : > { %p241_p5 = scmp.lt.s32.totalorder %s3086_s8, 31  ;;  %p247_p6 = scmp.eq.s32.totalorder %s4206_s25, 0 }
  0x10   : > { %p248_p7 = scmp.eq.s32.totalorder %s4202_s24, 0 }
  0x11   : > { %s6010_s8 = smov (!%p241_p5, %s3086_s8), 31 }
  0x12   : > { %p249_p8 = pnand %p248_p7, %p247_p6  ;;  %s3087_s10 = sshll.u32 %s6010_s8, 3 }
  0x13   : > { %s4298_s13 = scalar_lea.vmem %s5914_s7, %s3087_s10 }
  0x14   : > { %252 = sbr.rel (%p249_p8) target bundleno = 61 (0x3d), region = 48 }
  0x19   : > { %v263_v0 = vld [vmem:[%s5907_s0] sm:$0xff]  ;;  %v265_v1 = vld [vmem:[%s5907_s0 + $0x8] sm:$0xff]  ;;  %v267_v2 = vld [vmem:[%s5907_s0 + $0x10] sm:$0xff] }
  0x1a   : > { %264 = vst [vmem:[#allocation2] sm:$0xff] %v263_v0  ;;  %v269_v3 = vld [vmem:[%s5907_s0 + $0x18] sm:$0xff]  ;;  %v271_v4 = vld [vmem:[%s5907_s0 + $0x20] sm:$0xff]  ;;  %v273_v5 = vld [vmem:[%s5907_s0 + $0x28] sm:$0xff] }
  0x1b   : > { %266 = vst [vmem:[#allocation2 + $0x8] sm:$0xff] %v265_v1  ;;  %v275_v6 = vld [vmem:[%s5907_s0 + $0x30] sm:$0xff]  ;;  %v277_v7 = vld [vmem:[%s5907_s0 + $0x38] sm:$0xff]  ;;  %v279_v8 = vld [vmem:[%s5907_s0 + $0x40] sm:$0xff] }
  0x1c   : > { %268 = vst [vmem:[#allocation2 + $0x10] sm:$0xff] %v267_v2  ;;  %v281_v9 = vld [vmem:[%s5907_s0 + $0x48] sm:$0xff]  ;;  %v283_v10 = vld [vmem:[%s5907_s0 + $0x50] sm:$0xff]  ;;  %v285_v11 = vld [vmem:[%s5907_s0 + $0x58] sm:$0xff] }
  0x1d   : > { %270 = vst [vmem:[#allocation2 + $0x18] sm:$0xff] %v269_v3  ;;  %v287_v12 = vld [vmem:[%s5907_s0 + $0x60] sm:$0xff]  ;;  %v289_v13 = vld [vmem:[%s5907_s0 + $0x68] sm:$0xff]  ;;  %v291_v14 = vld [vmem:[%s5907_s0 + $0x70] sm:$0xff] }
  0x1e   : > { %272 = vst [vmem:[#allocation2 + $0x20] sm:$0xff] %v271_v4  ;;  %v293_v15 = vld [vmem:[%s5907_s0 + $0x78] sm:$0xff]  ;;  %v295_v16 = vld [vmem:[%s5907_s0 + $0x80] sm:$0xff]  ;;  %v297_v17 = vld [vmem:[%s5907_s0 + $0x88] sm:$0xff] }
  0x1f   : > { %274 = vst [vmem:[#allocation2 + $0x28] sm:$0xff] %v273_v5  ;;  %v299_v18 = vld [vmem:[%s5907_s0 + $0x90] sm:$0xff]  ;;  %v301_v19 = vld [vmem:[%s5907_s0 + $0x98] sm:$0xff]  ;;  %v303_v20 = vld [vmem:[%s5907_s0 + $0xa0] sm:$0xff] }
  0x20   : > { %276 = vst [vmem:[#allocation2 + $0x30] sm:$0xff] %v275_v6  ;;  %v305_v21 = vld [vmem:[%s5907_s0 + $0xa8] sm:$0xff]  ;;  %v307_v22 = vld [vmem:[%s5907_s0 + $0xb0] sm:$0xff]  ;;  %v309_v23 = vld [vmem:[%s5907_s0 + $0xb8] sm:$0xff] }
  0x21   : > { %278 = vst [vmem:[#allocation2 + $0x38] sm:$0xff] %v277_v7  ;;  %v311_v24 = vld [vmem:[%s5907_s0 + $0xc0] sm:$0xff]  ;;  %v313_v25 = vld [vmem:[%s5907_s0 + $0xc8] sm:$0xff]  ;;  %v315_v26 = vld [vmem:[%s5907_s0 + $0xd0] sm:$0xff] }
  0x22   : > { %280 = vst [vmem:[#allocation2 + $0x40] sm:$0xff] %v279_v8  ;;  %v317_v27 = vld [vmem:[%s5907_s0 + $0xd8] sm:$0xff]  ;;  %v319_v28 = vld [vmem:[%s5907_s0 + $0xe0] sm:$0xff]  ;;  %v321_v29 = vld [vmem:[%s5907_s0 + $0xe8] sm:$0xff] }
  0x23   : > { %282 = vst [vmem:[#allocation2 + $0x48] sm:$0xff] %v281_v9  ;;  %v323_v30 = vld [vmem:[%s5907_s0 + $0xf0] sm:$0xff]  ;;  %v325_v31 = vld [vmem:[%s5907_s0 + $0xf8] sm:$0xff] }
  0x24   : > { %284 = vst [vmem:[#allocation2 + $0x50] sm:$0xff] %v283_v10 }
  0x25   : > { %286 = vst [vmem:[#allocation2 + $0x58] sm:$0xff] %v285_v11 }
  0x26   : > { %288 = vst [vmem:[#allocation2 + $0x60] sm:$0xff] %v287_v12 }
  0x27   : > { %290 = vst [vmem:[#allocation2 + $0x68] sm:$0xff] %v289_v13 }
  0x28   : > { %292 = vst [vmem:[#allocation2 + $0x70] sm:$0xff] %v291_v14 }
  0x29   : > { %294 = vst [vmem:[#allocation2 + $0x78] sm:$0xff] %v293_v15 }
  0x2a   : > { %296 = vst [vmem:[#allocation2 + $0x80] sm:$0xff] %v295_v16 }
  0x2b   : > { %298 = vst [vmem:[#allocation2 + $0x88] sm:$0xff] %v297_v17 }
  0x2c   : > { %300 = vst [vmem:[#allocation2 + $0x90] sm:$0xff] %v299_v18 }
  0x2d   : > { %302 = vst [vmem:[#allocation2 + $0x98] sm:$0xff] %v301_v19 }
  0x2e   : > { %304 = vst [vmem:[#allocation2 + $0xa0] sm:$0xff] %v303_v20 }
  0x2f   : > { %306 = vst [vmem:[#allocation2 + $0xa8] sm:$0xff] %v305_v21 }
  0x30   : > { %308 = vst [vmem:[#allocation2 + $0xb0] sm:$0xff] %v307_v22 }
  0x31   : > { %310 = vst [vmem:[#allocation2 + $0xb8] sm:$0xff] %v309_v23 }
  0x32   : > { %312 = vst [vmem:[#allocation2 + $0xc0] sm:$0xff] %v311_v24 }
  0x33   : > { %314 = vst [vmem:[#allocation2 + $0xc8] sm:$0xff] %v313_v25 }
  0x34   : > { %316 = vst [vmem:[#allocation2 + $0xd0] sm:$0xff] %v315_v26 }
  0x35   : > { %318 = vst [vmem:[#allocation2 + $0xd8] sm:$0xff] %v317_v27 }
  0x36   : > { %320 = vst [vmem:[#allocation2 + $0xe0] sm:$0xff] %v319_v28 }
  0x37   : > { %322 = vst [vmem:[#allocation2 + $0xe8] sm:$0xff] %v321_v29 }
  0x38   : > { %324 = vst [vmem:[#allocation2 + $0xf0] sm:$0xff] %v323_v30 }
  0x39   : > { %326 = vst [vmem:[#allocation2 + $0xf8] sm:$0xff] %v325_v31 }
  0x3a   : > { %332 = vsyncadd [#allocation4], 4096 }
  0x3b   : > { %4198 = dma.done.wait [#allocation4], 4096 }
  0x3c   : > { %4199 = vsyncadd [#allocation4], 4294963200 }
  0x3d PF: > { %s337_s18 = sshra.s32 %s4292_s9, 3  ;;  %s4398_s19 = scalar_lea.vmem [#allocation2], %s4292_s9 }
  0x3e   : > { %s358_s22 = scalar_lea.vmem %s5913_s6, %s4292_s9  ;;  %p3091_p9 = scmp.ne.s32.totalorder %s4206_s25, 0 }
  0x3f   : > { %s3732_s21 = sshll.u32 (!%p3091_p9), %s337_s18, 2 }
  0x40   : > { %v4401_v32 = vld [vmem:[%s4398_s19 + $0x4] sm:$0xf]  ;;  %v4404_v33 = vld [vmem:[%s4398_s19] sm:$0xf]  ;;  %v4413_v36 = vld [vmem:[%s4398_s19 + $0x8] sm:$0xf0] }
  0x41   : > { %5920 = vst [vmem:[#allocation7_spill] sm:$0xff] %v4401_v32  ;;  %v4407_v34 = vld [vmem:[%s4398_s19 + $0x4] sm:$0xf]  ;;  %v4410_v35 = vld [vmem:[%s4398_s19] sm:$0xf] }
  0x42   : > { %5921 = vst [vmem:[#allocation8_spill] sm:$0xff] %v4404_v33  ;;  %v4416_v37 = vld [vmem:[%s4398_s19 + $0x4] sm:$0xf0]  ;;  %v4419_v38 = vld [vmem:[%s4398_s19 + $0x8] sm:$0xf0] }
  0x43   : > { %5922 = vst [vmem:[#allocation9_spill] sm:$0xff] %v4413_v36  ;;  %v4422_v39 = vld [vmem:[%s4398_s19 + $0x4] sm:$0xf0]  ;;  %v4425_v40 = vld [vmem:[%s4398_s19 + $0x14] sm:$0xf] }
  0x44   : > { %5923 = vst [vmem:[#allocation10_spill] sm:$0xff] %v4416_v37  ;;  %v4428_v41 = vld [vmem:[%s4398_s19 + $0x10] sm:$0xf]  ;;  %v4431_v42 = vld [vmem:[%s4398_s19 + $0x14] sm:$0xf] }
  0x45   : > { %5924 = vst [vmem:[#allocation11_spill] sm:$0xff] %v4425_v40  ;;  %v4434_v43 = vld [vmem:[%s4398_s19 + $0x10] sm:$0xf]  ;;  %v4437_v44 = vld [vmem:[%s4398_s19 + $0x18] sm:$0xf0] }
  0x46   : > { %5925 = vst [vmem:[#allocation12_spill] sm:$0xff] %v4428_v41  ;;  %v4440_v45 = vld [vmem:[%s4398_s19 + $0x14] sm:$0xf0]  ;;  %v4443_v46 = vld [vmem:[%s4398_s19 + $0x18] sm:$0xf0] }
  0x47   : > { %5926 = vst [vmem:[#allocation13_spill] sm:$0xff] %v4437_v44  ;;  %v4446_v47 = vld [vmem:[%s4398_s19 + $0x14] sm:$0xf0]  ;;  %v4449_v48 = vld [vmem:[%s4398_s19 + $0x24] sm:$0xf] }
  0x48   : > { %5927 = vst [vmem:[#allocation14_spill] sm:$0xff] %v4440_v45  ;;  %v4452_v49 = vld [vmem:[%s4398_s19 + $0x20] sm:$0xf]  ;;  %v4455_v50 = vld [vmem:[%s4398_s19 + $0x24] sm:$0xf] }
  0x49   : > { %5928 = vst [vmem:[#allocation15_spill] sm:$0xff] %v4449_v48  ;;  %v4458_v51 = vld [vmem:[%s4398_s19 + $0x20] sm:$0xf]  ;;  %v4461_v52 = vld [vmem:[%s4398_s19 + $0x28] sm:$0xf0]  ;;  %v4616_v48 = vld [vmem:[%s358_s22 + $0x50] sm:$0xff] }
  0x4a   : > { %5929 = vst [vmem:[#allocation16_spill] sm:$0xff] %v4452_v49  ;;  %v4464_v53 = vld [vmem:[%s4398_s19 + $0x24] sm:$0xf0]  ;;  %v4467_v54 = vld [vmem:[%s4398_s19 + $0x28] sm:$0xf0]  ;;  %v4626_v49 = vld [vmem:[%s358_s22 + $0x78] sm:$0xff] }
  0x4b   : > { %5930 = vst [vmem:[#allocation17_spill] sm:$0xff] %v4461_v52  ;;  %v4470_v55 = vld [vmem:[%s4398_s19 + $0x24] sm:$0xf0]  ;;  %v4473_v56 = vld [vmem:[%s4398_s19 + $0x34] sm:$0xf]  ;;  %v4618_v52 = vld [vmem:[%s358_s22 + $0x58] sm:$0xff] }
  0x4c   : > { %5931 = vst [vmem:[#allocation18_spill] sm:$0xff] %v4464_v53  ;;  %v4476_v57 = vld [vmem:[%s4398_s19 + $0x30] sm:$0xf]  ;;  %v4479_v58 = vld [vmem:[%s4398_s19 + $0x34] sm:$0xf] }
  0x4d   : > { %5932 = vst [vmem:[#allocation19_spill] sm:$0xff] %v4473_v56  ;;  %v4482_v59 = vld [vmem:[%s4398_s19 + $0x30] sm:$0xf]  ;;  %v4485_v60 = vld [vmem:[%s4398_s19 + $0x38] sm:$0xf0]  ;;  %v4596_v56 = vld [vmem:[%s358_s22] sm:$0xff] }
  0x4e   : > { %5933 = vst [vmem:[#allocation20_spill] sm:$0xff] %v4476_v57  ;;  %v4488_v61 = vld [vmem:[%s4398_s19 + $0x34] sm:$0xf0]  ;;  %v4491_v62 = vld [vmem:[%s4398_s19 + $0x38] sm:$0xf0]  ;;  %v4606_v57 = vld [vmem:[%s358_s22 + $0x28] sm:$0xff] }
  0x4f   : > { %5934 = vst [vmem:[#allocation21_spill] sm:$0xff] %v4485_v60  ;;  %v4494_v63 = vld [vmem:[%s4398_s19 + $0x34] sm:$0xf0]  ;;  %v4497_v0 = vld [vmem:[%s4398_s19 + $0x44] sm:$0xf]  ;;  %v4600_v60 = vld [vmem:[%s358_s22 + $0x10] sm:$0xff] }
  0x50   : > { %5935 = vst [vmem:[#allocation22_spill] sm:$0xff] %v4488_v61  ;;  %v4500_v1 = vld [vmem:[%s4398_s19 + $0x40] sm:$0xf]  ;;  %v4503_v2 = vld [vmem:[%s4398_s19 + $0x44] sm:$0xf]  ;;  %v4602_v61 = vld [vmem:[%s358_s22 + $0x18] sm:$0xff] }
  0x51   : > { %5936 = vst [vmem:[#allocation23_spill] sm:$0xff] %v4497_v0  ;;  %v4506_v3 = vld [vmem:[%s4398_s19 + $0x40] sm:$0xf]  ;;  %v4509_v4 = vld [vmem:[%s4398_s19 + $0x48] sm:$0xf0]  ;;  %v4624_v53 = vld [vmem:[%s358_s22 + $0x70] sm:$0xff] }
  0x52   : > { %5937 = vst [vmem:[#allocation24_spill] sm:$0xff] %v4500_v1  ;;  %v4512_v5 = vld [vmem:[%s4398_s19 + $0x44] sm:$0xf0]  ;;  %v4515_v6 = vld [vmem:[%s4398_s19 + $0x48] sm:$0xf0] }
  0x53   : > { %5938 = vst [vmem:[#allocation25_spill] sm:$0xff] %v4509_v4  ;;  %v4518_v7 = vld [vmem:[%s4398_s19 + $0x44] sm:$0xf0]  ;;  %v4521_v8 = vld [vmem:[%s4398_s19 + $0x54] sm:$0xf] }
  0x54   : > { %5939 = vst [vmem:[#allocation26_spill] sm:$0xff] %v4512_v5  ;;  %v4524_v9 = vld [vmem:[%s4398_s19 + $0x50] sm:$0xf]  ;;  %v4527_v10 = vld [vmem:[%s4398_s19 + $0x54] sm:$0xf] }
  0x55   : > { %5940 = vst [vmem:[#allocation27_spill] sm:$0xff] %v4521_v8  ;;  %v4530_v11 = vld [vmem:[%s4398_s19 + $0x50] sm:$0xf]  ;;  %v4533_v12 = vld [vmem:[%s4398_s19 + $0x58] sm:$0xf0] }
  0x56   : > { %5941 = vst [vmem:[#allocation28_spill] sm:$0xff] %v4524_v9  ;;  %v4536_v13 = vld [vmem:[%s4398_s19 + $0x54] sm:$0xf0]  ;;  %v4539_v14 = vld [vmem:[%s4398_s19 + $0x58] sm:$0xf0] }
  0x57   : > { %5942 = vst [vmem:[#allocation29_spill] sm:$0xff] %v4533_v12  ;;  %v4542_v15 = vld [vmem:[%s4398_s19 + $0x54] sm:$0xf0]  ;;  %v4545_v16 = vld [vmem:[%s4398_s19 + $0x64] sm:$0xf] }
  0x58   : > { %5943 = vst [vmem:[#allocation30_spill] sm:$0xff] %v4536_v13  ;;  %v4548_v17 = vld [vmem:[%s4398_s19 + $0x60] sm:$0xf]  ;;  %v4551_v18 = vld [vmem:[%s4398_s19 + $0x64] sm:$0xf] }
  0x59   : > { %5944 = vst [vmem:[#allocation31_spill] sm:$0xff] %v4545_v16  ;;  %v4554_v19 = vld [vmem:[%s4398_s19 + $0x60] sm:$0xf]  ;;  %v4557_v20 = vld [vmem:[%s4398_s19 + $0x68] sm:$0xf0]  ;;  %v4608_v16 = vld [vmem:[%s358_s22 + $0x30] sm:$0xff] }
  0x5a   : > { %5945 = vst [vmem:[#allocation32_spill] sm:$0xff] %v4548_v17  ;;  %v4560_v21 = vld [vmem:[%s4398_s19 + $0x64] sm:$0xf0]  ;;  %v4563_v22 = vld [vmem:[%s4398_s19 + $0x68] sm:$0xf0] }
  0x5b   : > { %5946 = vst [vmem:[#allocation33_spill] sm:$0xff] %v4557_v20  ;;  %v4566_v23 = vld [vmem:[%s4398_s19 + $0x64] sm:$0xf0]  ;;  %v4569_v24 = vld [vmem:[%s4398_s19 + $0x74] sm:$0xf] }
  0x5c   : > { %5947 = vst [vmem:[#allocation34_spill] sm:$0xff] %v4560_v21  ;;  %v4576_v25 = vld [vmem:[%s4398_s19 + $0x70] sm:$0xf]  ;;  %v4579_v26 = vld [vmem:[%s4398_s19 + $0x74] sm:$0xf]  ;;  %v4614_v20 = vld [vmem:[%s358_s22 + $0x48] sm:$0xff] }
  0x5d   : > { %5948 = vst [vmem:[#allocation35_spill] sm:$0xff] %v4569_v24  ;;  %v4582_v27 = vld [vmem:[%s4398_s19 + $0x70] sm:$0xf]  ;;  %v4585_v28 = vld [vmem:[%s4398_s19 + $0x78] sm:$0xf0]  ;;  %v4598_v24 = vld [vmem:[%s358_s22 + $0x8] sm:$0xff] }
  0x5e   : > { %5949 = vst [vmem:[#allocation36_spill] sm:$0xff] %v4576_v25  ;;  %v4588_v29 = vld [vmem:[%s4398_s19 + $0x74] sm:$0xf0]  ;;  %v4591_v30 = vld [vmem:[%s4398_s19 + $0x78] sm:$0xf0]  ;;  %v4604_v25 = vld [vmem:[%s358_s22 + $0x20] sm:$0xff] }
  0x5f   : > { %5950 = vst [vmem:[#allocation37_spill] sm:$0xff] %v4585_v28  ;;  %v4594_v31 = vld [vmem:[%s4398_s19 + $0x74] sm:$0xf0]  ;;  %v4620_v21 = vld [vmem:[%s358_s22 + $0x60] sm:$0xff]  ;;  %v4622_v17 = vld [vmem:[%s358_s22 + $0x68] sm:$0xff] }
  0x60   : > { %5951 = vst [vmem:[#allocation38_spill] sm:$0xff] %v4588_v29  ;;  %v4610_v28 = vld [vmem:[%s358_s22 + $0x38] sm:$0xff]  ;;  %v4612_v29 = vld [vmem:[%s358_s22 + $0x40] sm:$0xff]  ;;  %s5769_s22 = scalar_lea.vmem (!%p3091_p9), [#allocation3], %s3732_s21 }
  0x61   : > { %5952 = vst [vmem:[#allocation39_spill] sm:$0xff] %v4618_v52  ;;  %377 = sbr.rel (%p3091_p9) target bundleno = 924 (0x39c), region = 71 }
  0x62   : > { %5953 = vst [vmem:[#allocation40_spill] sm:$0xff] %v4620_v21 }
  0x63   : > { %5954 = vst [vmem:[#allocation41_spill] sm:$0xff] %v4622_v17 }
  0x64   : > { %5955 = vst [vmem:[#allocation42_spill] sm:$0xff] %v4624_v53 }
  0x65   : > { %5956 = vst [vmem:[#allocation43_spill] sm:$0xff] %v4626_v49 }
  0x66   : > { %v3905_v8 = vld [vmem:[%s5908_s1 + $0x38] sm:$0xff]  ;;  %v3904_v40 = vld [vmem:[%s5908_s1 + $0x30] sm:$0xff]  ;;  %v3903_v13 = vld [vmem:[%s5908_s1 + $0x28] sm:$0xff]  ;;  %v3099_v41 = vor.u32 %v4407_v34, %v4419_v38  ;;  %v3131_v34 = vor.u32 %v4503_v2, %v4515_v6 }
  0x67   : > { %v3913_v12 = vld [vmem:[%s5908_s1 + $0x78] sm:$0xff]  ;;  %586 = vmatpush.bf16.msra.mxu0 %v3905_v8  ;;  %v3912_v44 = vld [vmem:[%s5908_s1 + $0x70] sm:$0xff]  ;;  %4105 = vmatpush.bf16.msra.mxu2 %v3905_v8  ;;  %v3911_v9 = vld [vmem:[%s5908_s1 + $0x68] sm:$0xff] }
  0x68   : > { %635 = vmatpush.bf16.msra.mxu1 %v3913_v12  ;;  %4113 = vmatpush.bf16.msra.mxu3 %v3913_v12  ;;  %v3902_v45 = vld [vmem:[%s5908_s1 + $0x20] sm:$0xff]  ;;  %v3901_v12 = vld [vmem:[%s5908_s1 + $0x18] sm:$0xff] }
  0x69   : > { %v3910_v8 = vld [vmem:[%s5908_s1 + $0x60] sm:$0xff] }
  0x6a   : > { %v3446_v38 = vld [vmem:[%s5909_s2 + $0x1c0] sm:$0xf] }
  0x6b   : > { %587 = vmatpush.bf16.msra.mxu0 %v3904_v40  ;;  %4106 = vmatpush.bf16.msra.mxu2 %v3904_v40  ;;  %v3909_v40 = vld [vmem:[%s5908_s1 + $0x58] sm:$0xff]  ;;  %v3966_v2 = vld [vmem:[%s5909_s2 + $0x19c] sm:$0xf0] }
  0x6c   : > { %636 = vmatpush.bf16.msra.mxu1 %v3912_v44  ;;  %4114 = vmatpush.bf16.msra.mxu3 %v3912_v44  ;;  %v3900_v44 = vld [vmem:[%s5908_s1 + $0x10] sm:$0xff] }
  0x6f   : > { %588 = vmatpush.bf16.msra.mxu0 %v3903_v13  ;;  %4107 = vmatpush.bf16.msra.mxu2 %v3903_v13  ;;  %v3899_v13 = vld [vmem:[%s5908_s1 + $0x8] sm:$0xff] }
  0x70   : > { %637 = vmatpush.bf16.msra.mxu1 %v3911_v9  ;;  %4115 = vmatpush.bf16.msra.mxu3 %v3911_v9  ;;  %v3908_v9 = vld [vmem:[%s5908_s1 + $0x50] sm:$0xff] }
  0x73   : > { %589 = vmatpush.bf16.msra.mxu0 %v3902_v45  ;;  %4108 = vmatpush.bf16.msra.mxu2 %v3902_v45  ;;  %v3907_v45 = vld [vmem:[%s5908_s1 + $0x48] sm:$0xff] }
  0x74   : > { %638 = vmatpush.bf16.msra.mxu1 %v3910_v8  ;;  %4116 = vmatpush.bf16.msra.mxu3 %v3910_v8  ;;  %v3898_v8 = vld [vmem:[%s5908_s1] sm:$0xff] }
  0x77   : > { %590 = vmatpush.bf16.msra.mxu0 %v3901_v12  ;;  %4109 = vmatpush.bf16.msra.mxu2 %v3901_v12  ;;  %v3906_v12 = vld [vmem:[%s5908_s1 + $0x40] sm:$0xff] }
  0x78   : > { %639 = vmatpush.bf16.msra.mxu1 %v3909_v40  ;;  %4117 = vmatpush.bf16.msra.mxu3 %v3909_v40  ;;  %v3095_v40 = vor.u32 %v4422_v39, %v4410_v35  ;;  %v3127_v35 = vor.u32 %v4518_v7, %v4506_v3  ;;  %v3974_v39 = vld [vmem:[%s5909_s2 + $0x1dc] sm:$0xf0]  ;;  %v3962_v3 = vld [vmem:[%s5909_s2 + $0x184] sm:$0xf] }
  0x79   : > { %v3416_v7 = vld [vmem:[%s5909_s2 + $0x1a0] sm:$0xf0] }
  0x7b   : > { %591 = vmatpush.bf16.msra.mxu0 %v3900_v44  ;;  %4110 = vmatpush.bf16.msra.mxu2 %v3900_v44  ;;  %v3103_v44 = vor.u32 %v4446_v47, %v4434_v43  ;;  %v3448_v43 = vld [vmem:[%s5909_s2 + $0x1e0] sm:$0xf0]  ;;  %v3414_v47 = vld [vmem:[%s5909_s2 + $0x180] sm:$0xf] }
  0x7c   : > { %640 = vmatpush.bf16.msra.mxu1 %v3908_v9  ;;  %4118 = vmatpush.bf16.msra.mxu3 %v3908_v9  ;;  %v3107_v9 = vor.u32 %v4431_v42, %v4443_v46  ;;  %v3447_v42 = vor.u32 %v3974_v39, %v3446_v38  ;;  %v3415_v6 = vor.u32 %v3966_v2, %v3414_v47  ;;  %v3954_v38 = vld [vmem:[%s5909_s2 + $0x144] sm:$0xf]  ;;  %v3424_v2 = vld [vmem:[%s5909_s2 + $0x1a8] sm:$0xf0] }
  0x7d   : > { %v3384_v39 = vld [vmem:[%s5909_s2 + $0x160] sm:$0xf0] }
  0x7f   : > { %592 = vmatpush.bf16.msra.mxu0 %v3899_v13  ;;  %4111 = vmatpush.bf16.msra.mxu2 %v3899_v13  ;;  %v3454_v13 = vld [vmem:[%s5909_s2 + $0x1c8] sm:$0xf] }
  0x80   : > { %641 = vmatpush.bf16.msra.mxu1 %v3907_v45  ;;  %4119 = vmatpush.bf16.msra.mxu3 %v3907_v45  ;;  %v3975_v45 = vld [vmem:[%s5909_s2 + $0x1e4] sm:$0xf0] }
  0x83   : > { %593 = vmatpush.bf16.msra.mxu0 %v3898_v8  ;;  %4112 = vmatpush.bf16.msra.mxu2 %v3898_v8  ;;  %v3419_v8 = vor.u32 %v3962_v3, %v3416_v7  ;;  %v3387_v3 = vor.u32 %v3954_v38, %v3384_v39  ;;  %v3938_v38 = vld [vmem:[%s5909_s2 + $0xc4] sm:$0xf] }
  0x84   : > { %642 = vmatpush.bf16.msra.mxu1 %v3906_v12  ;;  %4120 = vmatpush.bf16.msra.mxu3 %v3906_v12  ;;  %v3455_v12 = vor.u32 %v3975_v45, %v3454_v13  ;;  %v3111_v13 = vor.u32 %v4470_v55, %v4458_v51  ;;  %v3115_v45 = vor.u32 %v4455_v50, %v4467_v54  ;;  %v3950_v51 = vld [vmem:[%s5909_s2 + $0x11c] sm:$0xf0]  ;;  %v3946_v50 = vld [vmem:[%s5909_s2 + $0x104] sm:$0xf] }
  0x85   : > { %v3352_v55 = vld [vmem:[%s5909_s2 + $0x120] sm:$0xf0] }
  0x86   : > { %594 = vmatmul.bf16.vlgmr.msra.gmra.mxu0 %v3095_v40  ;;  %614 = vmatmul.bf16.vlgmr.msra.gmra.mxu2 %v3127_v35  ;;  %v3971_v40 = vld [vmem:[%s5909_s2 + $0x1cc] sm:$0xf]  ;;  %v3320_v39 = vld [vmem:[%s5909_s2 + $0xe0] sm:$0xf0] }
  0x87   : > { %643 = vmatmul.bf16.vlgmr.msra.gmra.mxu1 %v3099_v41  ;;  %v3970_v41 = vld [vmem:[%s5909_s2 + $0x1c4] sm:$0xf]  ;;  %663 = vmatmul.bf16.vlgmr.msra.gmra.mxu3 %v3131_v34  ;;  %v3958_v34 = vld [vmem:[%s5909_s2 + $0x15c] sm:$0xf0] }
  0x88   : > { %v3451_v46 = vor.u32 %v3970_v41, %v3448_v43  ;;  %1110 = vmatpush.bf16.msrb.mxu2 %v3447_v42  ;;  %1208 = vmatpush.bf16.msrb.mxu0 %v3455_v12  ;;  %v3422_v41 = vld [vmem:[%s5909_s2 + $0x188] sm:$0xf]  ;;  %v3963_v43 = vld [vmem:[%s5909_s2 + $0x18c] sm:$0xf]  ;;  %v3139_v12 = vor.u32 %v4527_v10, %v4539_v14  ;;  %v3355_v14 = vor.u32 %v3946_v50, %v3352_v55 }
  0x89   : > { %v3967_v42 = vld [vmem:[%s5909_s2 + $0x1a4] sm:$0xf0]  ;;  %v3427_v7 = vor.u32 %v3963_v43, %v3424_v2  ;;  %v3328_v55 = vld [vmem:[%s5909_s2 + $0xe8] sm:$0xf0] }
  0x8a   : > { %1159 = vmatpush.bf16.msrb.mxu3 %v3451_v46  ;;  %v3423_v47 = vor.u32 %v3967_v42, %v3422_v41  ;;  %v3390_v10 = vld [vmem:[%s5909_s2 + $0x148] sm:$0xf]  ;;  %v3323_v42 = vor.u32 %v3938_v38, %v3320_v39  ;;  %v3147_v38 = vor.u32 %v4551_v18, %v4563_v22  ;;  %v3931_v18 = vld [vmem:[%s5909_s2 + $0x8c] sm:$0xf]  ;;  %v3918_v39 = vld [vmem:[%s5909_s2 + $0x1c] sm:$0xf0] }
  0x8b   : > { %v3358_v43 = vld [vmem:[%s5909_s2 + $0x108] sm:$0xf]  ;;  %v3296_v22 = vld [vmem:[%s5909_s2 + $0xa8] sm:$0xf0] }
  0x8c   : > { %1111 = vmatpush.bf16.msrb.mxu2 %v3415_v6  ;;  %1209 = vmatpush.bf16.msrb.mxu0 %v3423_v47  ;;  %v3135_v6 = vor.u32 %v4542_v15, %v4530_v11  ;;  %v3959_v11 = vld [vmem:[%s5909_s2 + $0x164] sm:$0xf0]  ;;  %v3947_v47 = vld [vmem:[%s5909_s2 + $0x10c] sm:$0xf] }
  0x8d   : > { %v3391_v15 = vor.u32 %v3959_v11, %v3390_v10  ;;  %v3943_v50 = vld [vmem:[%s5909_s2 + $0xe4] sm:$0xf0] }
  0x8e   : > { %1160 = vmatpush.bf16.msrb.mxu3 %v3419_v8  ;;  %v3350_v8 = vld [vmem:[%s5909_s2 + $0x100] sm:$0xf] }
  0x8f   : > { %v3351_v54 = vor.u32 %v3950_v51, %v3350_v8  ;;  %v3326_v8 = vld [vmem:[%s5909_s2 + $0xc8] sm:$0xf] }
  0x90   : > { %1210 = vmatpush.bf16.msrb.mxu0 %v3391_v15  ;;  %v3327_v11 = vor.u32 %v3943_v50, %v3326_v8  ;;  %v3926_v15 = vld [vmem:[%s5909_s2 + $0x5c] sm:$0xf0]  ;;  %v3915_v8 = vld [vmem:[%s5909_s2 + $0xc] sm:$0xf] }
  0x92   : > { %1161 = vmatpush.bf16.msrb.mxu3 %v3387_v3  ;;  %v3360_v3 = vld [vmem:[%s5909_s2 + $0x128] sm:$0xf0] }
  0x96   : > { %599 = vmatmul.bf16.gmra.mxu0 %v3103_v44  ;;  %v3456_v44 = vld [vmem:[%s5909_s2 + $0x1e8] sm:$0xf0]  ;;  %619 = vmatmul.bf16.gmra.mxu2 %v3135_v6  ;;  %v3930_v6 = vld [vmem:[%s5909_s2 + $0x84] sm:$0xf] }
  0x97   : > { %648 = vmatmul.bf16.gmra.mxu1 %v3107_v9  ;;  %v3382_v9 = vld [vmem:[%s5909_s2 + $0x140] sm:$0xf]  ;;  %v3459_v35 = vor.u32 %v3971_v40, %v3456_v44  ;;  %668 = vmatmul.bf16.gmra.mxu3 %v3139_v12  ;;  %v3955_v40 = vld [vmem:[%s5909_s2 + $0x14c] sm:$0xf]  ;;  %v3288_v12 = vld [vmem:[%s5909_s2 + $0xa0] sm:$0xf0] }
  0x98   : > { %v3383_v46 = vor.u32 %v3958_v34, %v3382_v9  ;;  %v3392_v44 = vld [vmem:[%s5909_s2 + $0x168] sm:$0xf0]  ;;  %v3318_v9 = vld [vmem:[%s5909_s2 + $0xc0] sm:$0xf]  ;;  %1162 = vmatpush.bf16.msrb.mxu3 %v3355_v14  ;;  %v3291_v10 = vor.u32 %v3930_v6, %v3288_v12  ;;  %v3919_v12 = vld [vmem:[%s5909_s2 + $0x24] sm:$0xf0] }
  0x99   : > { %1257 = vmatpush.bf16.msrb.mxu1 %v3459_v35  ;;  %v3395_v35 = vor.u32 %v3955_v40, %v3392_v44  ;;  %v3942_v34 = vld [vmem:[%s5909_s2 + $0xdc] sm:$0xf0]  ;;  %v3119_v44 = vor.u32 %v4494_v63, %v4482_v59  ;;  %v3151_v59 = vor.u32 %v4594_v31, %v4582_v27  ;;  %v3935_v63 = vld [vmem:[%s5909_s2 + $0xa4] sm:$0xf0]  ;;  %v3299_v27 = vor.u32 %v3931_v18, %v3296_v22  ;;  %v3968_v18 = vld [vmem:[%s5909_s2 + $0x1ac] sm:$0xf0] }
  0x9a   : > { %1112 = vmatpush.bf16.msrb.mxu2 %v3383_v46  ;;  %v3319_v41 = vor.u32 %v3942_v34, %v3318_v9  ;;  %v3951_v46 = vld [vmem:[%s5909_s2 + $0x124] sm:$0xf0]  ;;  %v3254_v14 = vld [vmem:[%s5909_s2 + $0x40] sm:$0xf]  ;;  %v3123_v9 = vor.u32 %v4479_v58, %v4491_v62  ;;  %v3143_v34 = vor.u32 %v4566_v23, %v4554_v19  ;;  %v3155_v58 = vor.u32 %v4579_v26, %v4591_v30  ;;  %v3922_v23 = vld [vmem:[%s5909_s2 + $0x44] sm:$0xf] }
  0x9b   : > { %v3359_v2 = vor.u32 %v3951_v46, %v3358_v43  ;;  %v3294_v62 = vld [vmem:[%s5909_s2 + $0x88] sm:$0xf]  ;;  %v3256_v26 = vld [vmem:[%s5909_s2 + $0x60] sm:$0xf0]  ;;  %v3222_v30 = vld [vmem:[%s5909_s2] sm:$0xf] }
  0x9c   : > { %1163 = vmatpush.bf16.msrb.mxu3 %v3323_v42  ;;  %v3295_v19 = vor.u32 %v3935_v63, %v3294_v62  ;;  %v3259_v31 = vor.u32 %v3922_v23, %v3256_v26  ;;  %v3262_v42 = vld [vmem:[%s5909_s2 + $0x48] sm:$0xf]  ;;  %v3923_v46 = vld [vmem:[%s5909_s2 + $0x4c] sm:$0xf]  ;;  %v3430_v63 = vld [vmem:[%s5909_s2 + $0x190] sm:$0xf] }
  0x9d   : > { %1258 = vmatpush.bf16.msrb.mxu1 %v3427_v7  ;;  %v3286_v7 = vld [vmem:[%s5909_s2 + $0x80] sm:$0xf]  ;;  %1211 = vmatpush.bf16.msrb.mxu0 %v3359_v2  ;;  %v3927_v43 = vld [vmem:[%s5909_s2 + $0x64] sm:$0xf0]  ;;  %v3264_v2 = vld [vmem:[%s5909_s2 + $0x68] sm:$0xf0] }
  0x9e   : > { %1113 = vmatpush.bf16.msrb.mxu2 %v3351_v54  ;;  %v3939_v54 = vld [vmem:[%s5909_s2 + $0xcc] sm:$0xf]  ;;  %v3964_v22 = vld [vmem:[%s5909_s2 + $0x194] sm:$0xf] }
  0x9f   : > { %v3331_v40 = vor.u32 %v3939_v54, %v3328_v55  ;;  %v3462_v55 = vld [vmem:[%s5909_s2 + $0x1d0] sm:$0xf]  ;;  %v3432_v23 = vld [vmem:[%s5909_s2 + $0x1b0] sm:$0xf0] }
  0xa0   : > { %1164 = vmatpush.bf16.msrb.mxu3 %v3291_v10  ;;  %v3976_v10 = vld [vmem:[%s5909_s2 + $0x1ec] sm:$0xf0]  ;;  %v3435_v26 = vor.u32 %v3964_v22, %v3432_v23  ;;  %v3948_v23 = vld [vmem:[%s5909_s2 + $0x114] sm:$0xf] }
  0xa1   : > { %1259 = vmatpush.bf16.msrb.mxu1 %v3395_v35  ;;  %v3255_v35 = vor.u32 %v3926_v15, %v3254_v14  ;;  %1212 = vmatpush.bf16.msrb.mxu0 %v3327_v11  ;;  %v3463_v11 = vor.u32 %v3976_v10, %v3462_v55  ;;  %v3972_v14 = vld [vmem:[%s5909_s2 + $0x1d4] sm:$0xf]  ;;  %v3952_v22 = vld [vmem:[%s5909_s2 + $0x12c] sm:$0xf0] }
  0xa2   : > { %1114 = vmatpush.bf16.msrb.mxu2 %v3319_v41  ;;  %v3223_v41 = vor.u32 %v3918_v39, %v3222_v30  ;;  %v3464_v15 = vld [vmem:[%s5909_s2 + $0x1f0] sm:$0xf0] }
  0xa4   : > { %1165 = vmatpush.bf16.msrb.mxu3 %v3259_v31 }
  0xa5   : > { %1213 = vmatpush.bf16.msrb.mxu0 %v3295_v19  ;;  %v3431_v19 = vor.u32 %v3968_v18, %v3430_v63 }
  0xa6   : > { %604 = vmatmul.bf16.gmra.mxu0 %v3111_v13  ;;  %v3934_v13 = vld [vmem:[%s5909_s2 + $0x9c] sm:$0xf0]  ;;  %624 = vmatmul.bf16.gmra.mxu2 %v3143_v34 }
  0xa7   : > { %653 = vmatmul.bf16.gmra.mxu1 %v3115_v45  ;;  %v3363_v45 = vor.u32 %v3947_v47, %v3360_v3  ;;  %v3287_v51 = vor.u32 %v3934_v13, %v3286_v7  ;;  %673 = vmatmul.bf16.gmra.mxu3 %v3147_v38  ;;  %v3263_v47 = vor.u32 %v3927_v43, %v3262_v42  ;;  %v3914_v7 = vld [vmem:[%s5909_s2 + $0x4] sm:$0xf]  ;;  %v3472_v38 = vld [vmem:[%s5909_s2 + $0x1f8] sm:$0xf0] }
  0xa8   : > { %v3267_v3 = vor.u32 %v3923_v46, %v3264_v2  ;;  %v3224_v13 = vld [vmem:[%s5909_s2 + $0x20] sm:$0xf0]  ;;  %v3438_v46 = vld [vmem:[%s5909_s2 + $0x198] sm:$0xf]  ;;  %v3965_v2 = vld [vmem:[%s5909_s2 + $0x19c] sm:$0xf] }
  0xa9   : > { %1260 = vmatpush.bf16.msrb.mxu1 %v3363_v45  ;;  %1115 = vmatpush.bf16.msrb.mxu2 %v3287_v51  ;;  %v3230_v45 = vld [vmem:[%s5909_s2 + $0x8] sm:$0xf]  ;;  %v3227_v6 = vor.u32 %v3914_v7, %v3224_v13  ;;  %v3232_v51 = vld [vmem:[%s5909_s2 + $0x28] sm:$0xf0]  ;;  %v3440_v7 = vld [vmem:[%s5909_s2 + $0x1b8] sm:$0xf0] }
  0xaa   : > { %1214 = vmatpush.bf16.msrb.mxu0 %v3263_v47  ;;  %v3231_v50 = vor.u32 %v3919_v12, %v3230_v45  ;;  %v3235_v54 = vor.u32 %v3915_v8, %v3232_v51  ;;  %v3969_v47 = vld [vmem:[%s5909_s2 + $0x1b4] sm:$0xf0]  ;;  %v3443_v13 = vor.u32 %v3965_v2, %v3440_v7  ;;  %v3398_v12 = vld [vmem:[%s5909_s2 + $0x150] sm:$0xf] }
  0xab   : > { %1166 = vmatpush.bf16.msrb.mxu3 %v3227_v6  ;;  %v3960_v8 = vld [vmem:[%s5909_s2 + $0x16c] sm:$0xf0] }
  0xac   : > { %v3399_v51 = vor.u32 %v3960_v8, %v3398_v12 }
  0xad   : > { %1261 = vmatpush.bf16.msrb.mxu1 %v3331_v40  ;;  %1116 = vmatpush.bf16.msrb.mxu2 %v3255_v35  ;;  %v3467_v40 = vor.u32 %v3972_v14, %v3464_v15  ;;  %v3973_v35 = vld [vmem:[%s5909_s2 + $0x1dc] sm:$0xf] }
  0xae   : > { %1215 = vmatpush.bf16.msrb.mxu0 %v3231_v50  ;;  %v3956_v50 = vld [vmem:[%s5909_s2 + $0x154] sm:$0xf] }
  0xaf   : > { %1355 = vmatpush.bf16.msra.mxu3 %v3467_v40 }
  0xb1   : > { %1262 = vmatpush.bf16.msrb.mxu1 %v3299_v27  ;;  %1117 = vmatpush.bf16.msrb.mxu2 %v3223_v41 }
  0xb3   : > { %1356 = vmatpush.bf16.msra.mxu3 %v3435_v26 }
  0xb5   : > { %1263 = vmatpush.bf16.msrb.mxu1 %v3267_v3  ;;  %1306 = vmatpush.bf16.msra.mxu2 %v3463_v11  ;;  %v3439_v3 = vor.u32 %v3969_v47, %v3438_v46  ;;  %v3376_v46 = vld [vmem:[%s5909_s2 + $0x138] sm:$0xf0] }
  0xb6   : > { %609 = vmatmul.bf16.gmra.mxu0 %v3119_v44  ;;  %629 = vmatmul.bf16.gmra.mxu2 %v3151_v59  ;;  %v3470_v44 = vld [vmem:[%s5909_s2 + $0x1d8] sm:$0xf]  ;;  %v3475_v59 = vor.u32 %v3973_v35, %v3472_v38  ;;  %v3957_v38 = vld [vmem:[%s5909_s2 + $0x15c] sm:$0xf] }
  0xb7   : > { %658 = vmatmul.bf16.gmra.mxu1 %v3123_v9  ;;  %678 = vmatmul.bf16.gmra.mxu3 %v3155_v58  ;;  %v3977_v9 = vld [vmem:[%s5909_s2 + $0x1f4] sm:$0xf0] }
  0xb8   : > { %v3471_v34 = vor.u32 %v3977_v9, %v3470_v44  ;;  %v3406_v35 = vld [vmem:[%s5909_s2 + $0x158] sm:$0xf] }
  0xb9   : > { %1264 = vmatpush.bf16.msrb.mxu1 %v3235_v54  ;;  %1307 = vmatpush.bf16.msra.mxu2 %v3431_v19  ;;  %v3400_v54 = vld [vmem:[%s5909_s2 + $0x170] sm:$0xf0]  ;;  %v3366_v19 = vld [vmem:[%s5909_s2 + $0x110] sm:$0xf] }
  0xba   : > { %1404 = vmatpush.bf16.msra.mxu0 %v3471_v34  ;;  %v3403_v55 = vor.u32 %v3956_v50, %v3400_v54  ;;  %v3961_v34 = vld [vmem:[%s5909_s2 + $0x174] sm:$0xf0]  ;;  %v3367_v26 = vor.u32 %v3952_v22, %v3366_v19 }
  0xbc   : > { %1357 = vmatpush.bf16.msra.mxu3 %v3403_v55  ;;  %v3334_v55 = vld [vmem:[%s5909_s2 + $0xd0] sm:$0xf] }
  0xbd   : > { %1453 = vmatpush.bf16.msra.mxu1 %v3475_v59  ;;  %1308 = vmatpush.bf16.msra.mxu2 %v3399_v51  ;;  %v3407_v59 = vor.u32 %v3961_v34, %v3406_v35 }
  0xbe   : > { %1405 = vmatpush.bf16.msra.mxu0 %v3439_v3 }
  0xc1   : > { %1454 = vmatpush.bf16.msra.mxu1 %v3443_v13  ;;  %1309 = vmatpush.bf16.msra.mxu2 %v3367_v26 }
  0xc2   : > { %1406 = vmatpush.bf16.msra.mxu0 %v3407_v59  ;;  %v3344_v59 = vld [vmem:[%s5909_s2 + $0xf8] sm:$0xf0] }
 0x103   : > { %v595_v58 = vpop.f32.mrf.mxu0 }
 0x104   : > { %v644_v62 = vpop.f32.mrf.mxu1 }
 0x105   : > { %v645_v27 = vadd.f32 %v644_v62, %v595_v58  ;;  %v3408_v58 = vld [vmem:[%s5909_s2 + $0x178] sm:$0xf0] }
 0x106   : > { %v3411_v62 = vor.u32 %v3957_v38, %v3408_v58  ;;  %v3941_v38 = vld [vmem:[%s5909_s2 + $0xdc] sm:$0xf] }
 0x107   : > { %v684_v41 = vmul.f32 %v645_v27, %v4596_v56  ;;  %v3368_v27 = vld [vmem:[%s5909_s2 + $0x130] sm:$0xf0]  ;;  %v3347_v58 = vor.u32 %v3941_v38, %v3344_v59  ;;  %v3278_v59 = vld [vmem:[%s5909_s2 + $0x58] sm:$0xf] }
 0x108   : > { %1455 = vmatpush.bf16.msra.mxu1 %v3411_v62  ;;  %v3272_v38 = vld [vmem:[%s5909_s2 + $0x70] sm:$0xf0] }
 0x109   : > { %v615_v12 = vpop.f32.mrf.mxu2 }
 0x10a   : > { %v664_v8 = vpop.f32.mrf.mxu3 }
 0x10b   : > { %v597_v30 = vpop.f32.mrf.mxu0 }
 0x10c   : > { %v646_v31 = vpop.f32.mrf.mxu1 }
 0x10d   : > { %v647_v39 = vadd.f32 %v646_v31, %v597_v30  ;;  %v3374_v30 = vld [vmem:[%s5909_s2 + $0x118] sm:$0xf] }
 0x10e   : > { %v3953_v31 = vld [vmem:[%s5909_s2 + $0x134] sm:$0xf0] }
 0x10f   : > { %v685_v42 = vmul.f32 %v647_v39, %v4598_v24  ;;  %v3371_v39 = vor.u32 %v3948_v23, %v3368_v27 }
 0x111   : > { %v4939_v43 = vpack.c.bf16 %v685_v42, %v684_v41  ;;  %v3375_v41 = vor.u32 %v3953_v31, %v3374_v30  ;;  %v3949_v42 = vld [vmem:[%s5909_s2 + $0x11c] sm:$0xf]  ;;  %1358 = vmatpush.bf16.msra.mxu3 %v3371_v39  ;;  %v617_v62 = vpop.f32.mrf.mxu2 }
 0x112   : > { %v3379_v47 = vor.u32 %v3949_v42, %v3376_v46  ;;  %v3936_v42 = vld [vmem:[%s5909_s2 + $0xac] sm:$0xf0]  ;;  %v3932_v46 = vld [vmem:[%s5909_s2 + $0x94] sm:$0xf] }
 0x113   : > { %1118 = vmatmul.bf16.vlgmr.msrb.gmra.mxu2 %v4939_v43  ;;  %1167 = vmatmul.bf16.vlgmr.msrb.gmra.mxu3 %v4939_v43  ;;  %v600_v45 = vpop.f32.mrf.mxu0 }
 0x114   : > { %1216 = vmatmul.bf16.vlgmr.msrb.gmra.mxu0 %v4939_v43  ;;  %1265 = vmatmul.bf16.vlgmr.msrb.gmra.mxu1 %v4939_v43  ;;  %v649_v6 = vpop.f32.mrf.mxu1 }
 0x115   : > { %v650_v10 = vadd.f32 %v649_v6, %v600_v45  ;;  %1407 = vmatpush.bf16.msra.mxu0 %v3375_v41  ;;  %1456 = vmatpush.bf16.msra.mxu1 %v3379_v47  ;;  %v3302_v41 = vld [vmem:[%s5909_s2 + $0x90] sm:$0xf] }
 0x116   : > { %v3303_v47 = vor.u32 %v3936_v42, %v3302_v41 }
 0x117   : > { %v686_v40 = vmul.f32 %v650_v10, %v4600_v60  ;;  %v3944_v10 = vld [vmem:[%s5909_s2 + $0xec] sm:$0xf0] }
 0x119   : > { %1457 = vmatpush.bf16.msra.mxu1 %v3347_v58  ;;  %v620_v31 = vpop.f32.mrf.mxu2  ;;  %v3929_v58 = vld [vmem:[%s5909_s2 + $0x74] sm:$0xf0] }
 0x11b   : > { %v602_v11 = vpop.f32.mrf.mxu0 }
 0x11c   : > { %v651_v14 = vpop.f32.mrf.mxu1 }
 0x11d   : > { %v652_v15 = vadd.f32 %v651_v14, %v602_v11  ;;  %v3940_v11 = vld [vmem:[%s5909_s2 + $0xd4] sm:$0xf]  ;;  %v3335_v14 = vor.u32 %v3944_v10, %v3334_v55  ;;  %v665_v55 = vadd.f32 %v664_v8, %v615_v12  ;;  %v3270_v12 = vld [vmem:[%s5909_s2 + $0x50] sm:$0xf] }
 0x11e   : > { %v3928_v8 = vld [vmem:[%s5909_s2 + $0x6c] sm:$0xf0] }
 0x11f   : > { %v687_v44 = vmul.f32 %v652_v15, %v4602_v61  ;;  %v3336_v15 = vld [vmem:[%s5909_s2 + $0xf0] sm:$0xf0]  ;;  %1310 = vmatpush.bf16.msra.mxu2 %v3335_v14 }
 0x120   : > { %v3339_v35 = vor.u32 %v3940_v11, %v3336_v15  ;;  %v692_v11 = vmul.f32 %v665_v55, %v4612_v29 }
 0x121   : > { %v4971_v9 = vpack.c.bf16 %v687_v44, %v686_v40  ;;  %v3342_v40 = vld [vmem:[%s5909_s2 + $0xd8] sm:$0xf]  ;;  %v622_v15 = vpop.f32.mrf.mxu2 }
 0x122   : > { %v3945_v44 = vld [vmem:[%s5909_s2 + $0xf4] sm:$0xf0]  ;;  %1359 = vmatpush.bf16.msra.mxu3 %v3339_v35  ;;  %v3924_v35 = vld [vmem:[%s5909_s2 + $0x54] sm:$0xf] }
 0x123   : > { %1123 = vmatmul.bf16.gmra.mxu2 %v4971_v9  ;;  %1172 = vmatmul.bf16.gmra.mxu3 %v4971_v9  ;;  %v605_v63 = vpop.f32.mrf.mxu0  ;;  %v3343_v34 = vor.u32 %v3945_v44, %v3342_v40 }
 0x124   : > { %1221 = vmatmul.bf16.gmra.mxu0 %v4971_v9  ;;  %1270 = vmatmul.bf16.gmra.mxu1 %v4971_v9  ;;  %v654_v18 = vpop.f32.mrf.mxu1 }
 0x125   : > { %v655_v2 = vadd.f32 %v654_v18, %v605_v63  ;;  %1408 = vmatpush.bf16.msra.mxu0 %v3343_v34  ;;  %v666_v63 = vpop.f32.mrf.mxu3  ;;  %1311 = vmatpush.bf16.msra.mxu2 %v3303_v47  ;;  %v3271_v34 = vor.u32 %v3928_v8, %v3270_v12 }
 0x126   : > { %v667_v10 = vadd.f32 %v666_v63, %v617_v62  ;;  %v3275_v62 = vor.u32 %v3924_v35, %v3272_v38  ;;  %v3279_v63 = vor.u32 %v3929_v58, %v3278_v59  ;;  %v3985_v59 = vld [vmem:[%s5911_s4 + $0x38] sm:$0xff] }
 0x127   : > { %v688_v45 = vmul.f32 %v655_v2, %v4604_v25  ;;  %v3304_v2 = vld [vmem:[%s5909_s2 + $0xb0] sm:$0xf0]  ;;  %v3993_v58 = vld [vmem:[%s5911_s4 + $0x78] sm:$0xff] }
 0x128   : > { %v693_v14 = vmul.f32 %v667_v10, %v4614_v20  ;;  %v3917_v10 = vld [vmem:[%s5909_s2 + $0x1c] sm:$0xf] }
 0x129   : > { %1312 = vmatpush.bf16.msra.mxu2 %v3271_v34 }
 0x12a   : > { %v5079_v44 = vpack.c.bf16 %v693_v14, %v692_v11  ;;  %v3248_v11 = vld [vmem:[%s5909_s2 + $0x38] sm:$0xf0] }
 0x12b   : > { %v607_v3 = vpop.f32.mrf.mxu0  ;;  %v3251_v14 = vor.u32 %v3917_v10, %v3248_v11 }
 0x12c   : > { %v656_v7 = vpop.f32.mrf.mxu1 }
 0x12d   : > { %v657_v13 = vadd.f32 %v656_v7, %v607_v3  ;;  %v669_v39 = vpop.f32.mrf.mxu3  ;;  %v3310_v3 = vld [vmem:[%s5909_s2 + $0x98] sm:$0xf] }
 0x12e   : > { %v3937_v7 = vld [vmem:[%s5909_s2 + $0xb4] sm:$0xf0] }
 0x12f   : > { %v689_v6 = vmul.f32 %v657_v13, %v4606_v57  ;;  %v3307_v13 = vor.u32 %v3932_v46, %v3304_v2 }
 0x131   : > { %v5015_v51 = vpack.c.bf16 %v689_v6, %v688_v45  ;;  %v3311_v45 = vor.u32 %v3937_v7, %v3310_v3  ;;  %v3933_v6 = vld [vmem:[%s5909_s2 + $0x9c] sm:$0xf]  ;;  %1360 = vmatpush.bf16.msra.mxu3 %v3307_v13  ;;  %v3916_v7 = vld [vmem:[%s5909_s2 + $0x14] sm:$0xf] }
 0x133   : > { %1128 = vmatmul.bf16.gmra.mxu2 %v5015_v51  ;;  %1177 = vmatmul.bf16.gmra.mxu3 %v5015_v51  ;;  %v610_v50 = vpop.f32.mrf.mxu0 }
 0x134   : > { %1226 = vmatmul.bf16.gmra.mxu0 %v5015_v51  ;;  %1275 = vmatmul.bf16.gmra.mxu1 %v5015_v51  ;;  %v659_v54 = vpop.f32.mrf.mxu1 }
 0x135   : > { %v660_v18 = vadd.f32 %v659_v54, %v610_v50  ;;  %v3312_v50 = vld [vmem:[%s5909_s2 + $0xb8] sm:$0xf0]  ;;  %1409 = vmatpush.bf16.msra.mxu0 %v3311_v45  ;;  %v671_v40 = vpop.f32.mrf.mxu3  ;;  %1361 = vmatpush.bf16.msra.mxu3 %v3275_v62  ;;  %v3240_v45 = vld [vmem:[%s5909_s2 + $0x30] sm:$0xf0] }
 0x136   : > { %v3315_v54 = vor.u32 %v3933_v6, %v3312_v50  ;;  %v672_v41 = vadd.f32 %v671_v40, %v622_v15  ;;  %v3246_v6 = vld [vmem:[%s5909_s2 + $0x18] sm:$0xf] }
 0x137   : > { %v690_v26 = vmul.f32 %v660_v18, %v4608_v16  ;;  %v3925_v18 = vld [vmem:[%s5909_s2 + $0x5c] sm:$0xf]  ;;  %v3921_v50 = vld [vmem:[%s5909_s2 + $0x34] sm:$0xf0] }
 0x138   : > { %1458 = vmatpush.bf16.msra.mxu1 %v3315_v54  ;;  %v695_v46 = vmul.f32 %v672_v41, %v4618_v52  ;;  %v3243_v54 = vor.u32 %v3916_v7, %v3240_v45  ;;  %v3247_v55 = vor.u32 %v3921_v50, %v3246_v6  ;;  %v4009_v41 = vld [vmem:[%s5911_s4 + $0xf8] sm:$0xff]  ;;  %v4008_v7 = vld [vmem:[%s5911_s4 + $0xf0] sm:$0xff]  ;;  %v3983_v6 = vld [vmem:[%s5911_s4 + $0x28] sm:$0xff] }
 0x139   : > { %1410 = vmatpush.bf16.msra.mxu0 %v3279_v63  ;;  %v3991_v50 = vld [vmem:[%s5911_s4 + $0x68] sm:$0xff] }
 0x13a   : > { %1362 = vmatpush.bf16.msra.mxu3 %v3243_v54 }
 0x13b   : > { %v612_v19 = vpop.f32.mrf.mxu0 }
 0x13c   : > { %v661_v22 = vpop.f32.mrf.mxu1 }
 0x13d   : > { %v662_v23 = vadd.f32 %v661_v22, %v612_v19  ;;  %v3280_v19 = vld [vmem:[%s5909_s2 + $0x78] sm:$0xf0]  ;;  %1411 = vmatpush.bf16.msra.mxu0 %v3247_v55 }
 0x13e   : > { %v3283_v22 = vor.u32 %v3925_v18, %v3280_v19  ;;  %2255 = vmatpush.bf16.msrb.mxu3 %v3993_v58 }
 0x13f   : > { %v691_v27 = vmul.f32 %v662_v23, %v4610_v28  ;;  %v625_v23 = vpop.f32.mrf.mxu2 }
 0x140   : > { %1459 = vmatpush.bf16.msra.mxu1 %v3283_v22 }
 0x141   : > { %v5047_v30 = vpack.c.bf16 %v691_v27, %v690_v26  ;;  %v674_v26 = vpop.f32.mrf.mxu3  ;;  %v670_v27 = vadd.f32 %v669_v39, %v620_v31  ;;  %v3238_v31 = vld [vmem:[%s5909_s2 + $0x10] sm:$0xf] }
 0x142   : > { %v3920_v39 = vld [vmem:[%s5909_s2 + $0x2c] sm:$0xf0]  ;;  %v675_v15 = vadd.f32 %v674_v26, %v625_v23  ;;  %v4001_v26 = vld [vmem:[%s5911_s4 + $0xb8] sm:$0xff] }
 0x143   : > { %1133 = vmatmul.bf16.gmra.mxu2 %v5047_v30  ;;  %1182 = vmatmul.bf16.gmra.mxu3 %v5047_v30  ;;  %v694_v42 = vmul.f32 %v670_v27, %v4616_v48  ;;  %v3239_v13 = vor.u32 %v3920_v39, %v3238_v31 }
 0x144   : > { %1231 = vmatmul.bf16.gmra.mxu0 %v5047_v30  ;;  %1280 = vmatmul.bf16.gmra.mxu1 %v5047_v30  ;;  %v696_v35 = vmul.f32 %v675_v15, %v4620_v21 }
 0x145   : > { %v5111_v47 = vpack.c.bf16 %v695_v46, %v694_v42  ;;  %1313 = vmatpush.bf16.msra.mxu2 %v3239_v13  ;;  %1460 = vmatpush.bf16.msra.mxu1 %v3251_v14  ;;  %v3984_v42 = vld [vmem:[%s5911_s4 + $0x30] sm:$0xff] }
 0x146   : > { %2304 = vmatpush.bf16.msrb.mxu0 %v4001_v26  ;;  %v3992_v46 = vld [vmem:[%s5911_s4 + $0x70] sm:$0xff] }
 0x147   : > { %v627_v2 = vpop.f32.mrf.mxu2  ;;  %2256 = vmatpush.bf16.msrb.mxu3 %v3992_v46 }
 0x149   : > { %v676_v3 = vpop.f32.mrf.mxu3  ;;  %2206 = vmatpush.bf16.msrb.mxu2 %v3985_v59  ;;  %2353 = vmatpush.bf16.msrb.mxu1 %v4009_v41 }
 0x14a   : > { %v677_v40 = vadd.f32 %v676_v3, %v627_v2  ;;  %v4000_v2 = vld [vmem:[%s5911_s4 + $0xb0] sm:$0xff]  ;;  %v5181_v3 = vld [vmem:[%s5910_s3] sm:$0xff] }
 0x14b   : > { %2305 = vmatpush.bf16.msrb.mxu0 %v4000_v2  ;;  %v5189_v13 = vperm.slane %v5181_v3, 2  ;;  %v5192_v45 = vperm.slane %v5181_v3, 3  ;;  %2257 = vmatpush.bf16.msrb.mxu3 %v3991_v50  ;;  %v5205_v14 = vperm.slane %v5181_v3, 0  ;;  %v4007_v50 = vld [vmem:[%s5911_s4 + $0xe8] sm:$0xff] }
 0x14c   : > { %v697_v34 = vmul.f32 %v677_v40, %v4622_v17 }
 0x14d   : > { %2207 = vmatpush.bf16.msrb.mxu2 %v3984_v42  ;;  %2354 = vmatpush.bf16.msrb.mxu1 %v4008_v7 }
 0x14e   : > { %v5143_v38 = vpack.c.bf16 %v697_v34, %v696_v35 }
 0x14f   : > { %v630_v12 = vpop.f32.mrf.mxu2 }
 0x151   : > { %v679_v8 = vpop.f32.mrf.mxu3  ;;  %2208 = vmatpush.bf16.msrb.mxu2 %v3983_v6  ;;  %2355 = vmatpush.bf16.msrb.mxu1 %v4007_v50 }
 0x152   : > { %v680_v18 = vadd.f32 %v679_v8, %v630_v12 }
 0x153   : > { %1138 = vmatmul.bf16.gmra.mxu2 %v5079_v44  ;;  %1187 = vmatmul.bf16.gmra.mxu3 %v5079_v44 }
 0x154   : > { %1236 = vmatmul.bf16.gmra.mxu0 %v5079_v44  ;;  %1285 = vmatmul.bf16.gmra.mxu1 %v5079_v44  ;;  %v698_v22 = vmul.f32 %v680_v18, %v4624_v53 }
 0x157   : > { %v632_v62 = vpop.f32.mrf.mxu2 }
 0x159   : > { %v681_v63 = vpop.f32.mrf.mxu3 }
 0x15a   : > { %v682_v19 = vadd.f32 %v681_v63, %v632_v62  ;;  %v3999_v62 = vld [vmem:[%s5911_s4 + $0xa8] sm:$0xff] }
 0x15b   : > { %2306 = vmatpush.bf16.msrb.mxu0 %v3999_v62 }
 0x15c   : > { %v699_v23 = vmul.f32 %v682_v19, %v4626_v49 }
 0x15e   : > { %v5160_v27 = vpack.c.bf16 %v699_v23, %v698_v22 }
 0x163   : > { %1143 = vmatmul.bf16.gmra.mxu2 %v5111_v47  ;;  %1192 = vmatmul.bf16.gmra.mxu3 %v5111_v47 }
 0x164   : > { %1241 = vmatmul.bf16.gmra.mxu0 %v5111_v47  ;;  %1290 = vmatmul.bf16.gmra.mxu1 %v5111_v47 }
 0x173   : > { %1148 = vmatmul.bf16.gmra.mxu2 %v5143_v38  ;;  %1197 = vmatmul.bf16.gmra.mxu3 %v5143_v38 }
 0x174   : > { %1246 = vmatmul.bf16.gmra.mxu0 %v5143_v38  ;;  %1295 = vmatmul.bf16.gmra.mxu1 %v5143_v38 }
 0x183   : > { %1153 = vmatmul.bf16.gmra.mxu2 %v5160_v27  ;;  %1202 = vmatmul.bf16.gmra.mxu3 %v5160_v27 }
 0x184   : > { %1251 = vmatmul.bf16.gmra.mxu0 %v5160_v27  ;;  %1300 = vmatmul.bf16.gmra.mxu1 %v5160_v27 }
 0x191   : > { %v1217_v31 = vpop.f32.mrf.mxu0  ;;  %v1266_v39 = vpop.f32.mrf.mxu1 }
 0x192   : > { %v1218_v10 = vadd.f32 %v1217_v31, %v5189_v13  ;;  %v1267_v11 = vadd.f32 %v1266_v39, %v5192_v45 }
 0x193   : > { %1314 = vmatmul.bf16.vlgmr.msra.gmra.mxu2 %v4939_v43  ;;  %1363 = vmatmul.bf16.vlgmr.msra.gmra.mxu3 %v4939_v43 }
 0x194   : > { %1412 = vmatmul.bf16.vlgmr.msra.gmra.mxu0 %v4939_v43  ;;  %1461 = vmatmul.bf16.vlgmr.msra.gmra.mxu1 %v4939_v43  ;;  %v5208_v43 = vperm.slane %v5181_v3, 1  ;;  %v1504_v35 = vmax.f32 %v1218_v10, 0.0  ;;  %v1505_v34 = vmax.f32 %v1267_v11, 0.0  ;;  %v3982_v10 = vld [vmem:[%s5911_s4 + $0x20] sm:$0xff] }
 0x195   : > { %v3990_v11 = vld [vmem:[%s5911_s4 + $0x60] sm:$0xff]  ;;  %2209 = vmatpush.bf16.msrb.mxu2 %v3982_v10 }
 0x196   : > { %v1119_v54 = vpop.f32.mrf.mxu2  ;;  %v1168_v55 = vpop.f32.mrf.mxu3  ;;  %2258 = vmatpush.bf16.msrb.mxu3 %v3990_v11 }
 0x197   : > { %v1120_v63 = vadd.f32 %v1119_v54, %v5205_v14  ;;  %v1169_v18 = vadd.f32 %v1168_v55, %v5208_v43 }
 0x199   : > { %v1219_v15 = vpop.f32.mrf.mxu0  ;;  %v1268_v40 = vpop.f32.mrf.mxu1  ;;  %v1502_v46 = vmax.f32 %v1120_v63, 0.0  ;;  %v1503_v2 = vmax.f32 %v1169_v18, 0.0 }
 0x19a   : > { %v1220_v12 = vadd.f32 %v1219_v15, %v5189_v13  ;;  %v1269_v8 = vadd.f32 %v1268_v40, %v5192_v45 }
 0x19c   : > { %v1512_v59 = vmax.f32 %v1220_v12, 0.0  ;;  %v1513_v58 = vmax.f32 %v1269_v8, 0.0 }
 0x19e   : > { %v5217_v19 = vpack.c.bf16 %v1512_v59, %v1504_v35  ;;  %v5219_v22 = vpack.c.bf16 %v1513_v58, %v1505_v34  ;;  %v1121_v23 = vpop.f32.mrf.mxu2  ;;  %v1170_v26 = vpop.f32.mrf.mxu3 }
 0x19f   : > { %v1122_v41 = vadd.f32 %v1121_v23, %v5205_v14  ;;  %v1171_v42 = vadd.f32 %v1170_v26, %v5208_v43  ;;  %v3998_v23 = vld [vmem:[%s5911_s4 + $0xa0] sm:$0xff] }
 0x1a0   : > { %2307 = vmatpush.bf16.msrb.mxu0 %v3998_v23 }
 0x1a1   : > { %v1510_v31 = vmax.f32 %v1122_v41, 0.0  ;;  %v1511_v39 = vmax.f32 %v1171_v42, 0.0  ;;  %v1222_v7 = vpop.f32.mrf.mxu0  ;;  %v1271_v6 = vpop.f32.mrf.mxu1 }
 0x1a2   : > { %v1223_v12 = vadd.f32 %v1222_v7, %v5189_v13  ;;  %v1272_v8 = vadd.f32 %v1271_v6, %v5192_v45 }
 0x1a3   : > { %v5226_v54 = vpack.c.bf16 %v1510_v31, %v1502_v46  ;;  %v5228_v55 = vpack.c.bf16 %v1511_v39, %v1503_v2  ;;  %1319 = vmatmul.bf16.gmra.mxu2 %v4971_v9  ;;  %1368 = vmatmul.bf16.gmra.mxu3 %v4971_v9 }
 0x1a4   : > { %1417 = vmatmul.bf16.gmra.mxu0 %v4971_v9  ;;  %1466 = vmatmul.bf16.gmra.mxu1 %v4971_v9  ;;  %v1520_v58 = vmax.f32 %v1223_v12, 0.0  ;;  %v1521_v62 = vmax.f32 %v1272_v8, 0.0 }
 0x1a6   : > { %v1124_v15 = vpop.f32.mrf.mxu2  ;;  %v1173_v40 = vpop.f32.mrf.mxu3 }
 0x1a7   : > { %v1125_v26 = vadd.f32 %v1124_v15, %v5205_v14  ;;  %v1174_v41 = vadd.f32 %v1173_v40, %v5208_v43  ;;  %v4006_v15 = vld [vmem:[%s5911_s4 + $0xe0] sm:$0xff] }
 0x1a8   : > { %2356 = vmatpush.bf16.msrb.mxu1 %v4006_v15 }
 0x1a9   : > { %v1224_v35 = vpop.f32.mrf.mxu0  ;;  %v1273_v34 = vpop.f32.mrf.mxu1  ;;  %v1518_v6 = vmax.f32 %v1125_v26, 0.0  ;;  %v1519_v50 = vmax.f32 %v1174_v41, 0.0 }
 0x1aa   : > { %v1225_v9 = vadd.f32 %v1224_v35, %v5189_v13  ;;  %v1274_v59 = vadd.f32 %v1273_v34, %v5192_v45  ;;  %v3981_v34 = vld [vmem:[%s5911_s4 + $0x18] sm:$0xff] }
 0x1ab   : > { %2210 = vmatpush.bf16.msrb.mxu2 %v3981_v34 }
 0x1ac   : > { %v1528_v63 = vmax.f32 %v1225_v9, 0.0  ;;  %v1529_v18 = vmax.f32 %v1274_v59, 0.0  ;;  %v3989_v9 = vld [vmem:[%s5911_s4 + $0x58] sm:$0xff] }
 0x1ad   : > { %2259 = vmatpush.bf16.msrb.mxu3 %v3989_v9 }
 0x1ae   : > { %v1126_v42 = vpop.f32.mrf.mxu2  ;;  %v1175_v46 = vpop.f32.mrf.mxu3  ;;  %v5249_v2 = vpack.c.bf16 %v1528_v63, %v1520_v58  ;;  %v5251_v31 = vpack.c.bf16 %v1529_v18, %v1521_v62 }
 0x1af   : > { %v1127_v39 = vadd.f32 %v1126_v42, %v5205_v14  ;;  %v1176_v7 = vadd.f32 %v1175_v46, %v5208_v43 }
 0x1b1   : > { %v1526_v10 = vmax.f32 %v1127_v39, 0.0  ;;  %v1527_v11 = vmax.f32 %v1176_v7, 0.0  ;;  %v1227_v12 = vpop.f32.mrf.mxu0  ;;  %v1276_v8 = vpop.f32.mrf.mxu1  ;;  %v3997_v7 = vld [vmem:[%s5911_s4 + $0x98] sm:$0xff] }
 0x1b2   : > { %v1228_v62 = vadd.f32 %v1227_v12, %v5189_v13  ;;  %v1277_v63 = vadd.f32 %v1276_v8, %v5192_v45  ;;  %2308 = vmatpush.bf16.msrb.mxu0 %v3997_v7 }
 0x1b3   : > { %1324 = vmatmul.bf16.gmra.mxu2 %v5015_v51  ;;  %1373 = vmatmul.bf16.gmra.mxu3 %v5015_v51  ;;  %v5260_v40 = vpack.c.bf16 %v1526_v10, %v1518_v6  ;;  %v5262_v35 = vpack.c.bf16 %v1527_v11, %v1519_v50 }
 0x1b4   : > { %1422 = vmatmul.bf16.gmra.mxu0 %v5015_v51  ;;  %1471 = vmatmul.bf16.gmra.mxu1 %v5015_v51  ;;  %v1536_v41 = vmax.f32 %v1228_v62, 0.0  ;;  %v1537_v42 = vmax.f32 %v1277_v63, 0.0 }
 0x1b6   : > { %v1129_v59 = vpop.f32.mrf.mxu2  ;;  %v1178_v58 = vpop.f32.mrf.mxu3 }
 0x1b7   : > { %v1130_v6 = vadd.f32 %v1129_v59, %v5205_v14  ;;  %v1179_v50 = vadd.f32 %v1178_v58, %v5208_v43  ;;  %v4005_v59 = vld [vmem:[%s5911_s4 + $0xd8] sm:$0xff] }
 0x1b8   : > { %2357 = vmatpush.bf16.msrb.mxu1 %v4005_v59 }
 0x1b9   : > { %v1229_v18 = vpop.f32.mrf.mxu0  ;;  %v1278_v23 = vpop.f32.mrf.mxu1  ;;  %v1534_v9 = vmax.f32 %v1130_v6, 0.0  ;;  %v1535_v62 = vmax.f32 %v1179_v50, 0.0 }
 0x1ba   : > { %v1230_v51 = vadd.f32 %v1229_v18, %v5189_v13  ;;  %v1279_v26 = vadd.f32 %v1278_v23, %v5192_v45 }
 0x1bc   : > { %v1544_v46 = vmax.f32 %v1230_v51, 0.0  ;;  %v1545_v39 = vmax.f32 %v1279_v26, 0.0 }
 0x1be   : > { %v1131_v10 = vpop.f32.mrf.mxu2  ;;  %v1180_v11 = vpop.f32.mrf.mxu3  ;;  %v5281_v12 = vpack.c.bf16 %v1544_v46, %v1536_v41  ;;  %v5283_v8 = vpack.c.bf16 %v1545_v39, %v1537_v42  ;;  %v3980_v41 = vld [vmem:[%s5911_s4 + $0x10] sm:$0xff] }
 0x1bf   : > { %v1132_v15 = vadd.f32 %v1131_v10, %v5205_v14  ;;  %v1181_v34 = vadd.f32 %v1180_v11, %v5208_v43  ;;  %v3988_v42 = vld [vmem:[%s5911_s4 + $0x50] sm:$0xff]  ;;  %2211 = vmatpush.bf16.msrb.mxu2 %v3980_v41 }
 0x1c0   : > { %2260 = vmatpush.bf16.msrb.mxu3 %v3988_v42 }
 0x1c1   : > { %v1542_v63 = vmax.f32 %v1132_v15, 0.0  ;;  %v1543_v18 = vmax.f32 %v1181_v34, 0.0  ;;  %v1232_v23 = vpop.f32.mrf.mxu0  ;;  %v1281_v51 = vpop.f32.mrf.mxu1 }
 0x1c2   : > { %v1233_v7 = vadd.f32 %v1232_v23, %v5189_v13  ;;  %v1282_v6 = vadd.f32 %v1281_v51, %v5192_v45 }
 0x1c3   : > { %1329 = vmatmul.bf16.gmra.mxu2 %v5047_v30  ;;  %1378 = vmatmul.bf16.gmra.mxu3 %v5047_v30  ;;  %v5292_v58 = vpack.c.bf16 %v1542_v63, %v1534_v9  ;;  %v5294_v26 = vpack.c.bf16 %v1543_v18, %v1535_v62  ;;  %v3996_v63 = vld [vmem:[%s5911_s4 + $0x90] sm:$0xff] }
 0x1c4   : > { %1427 = vmatmul.bf16.gmra.mxu0 %v5047_v30  ;;  %1476 = vmatmul.bf16.gmra.mxu1 %v5047_v30  ;;  %v1552_v15 = vmax.f32 %v1233_v7, 0.0  ;;  %v1553_v34 = vmax.f32 %v1282_v6, 0.0 }
 0x1c5   : > { %2309 = vmatpush.bf16.msrb.mxu0 %v3996_v63 }
 0x1c6   : > { %v1134_v46 = vpop.f32.mrf.mxu2  ;;  %v1183_v39 = vpop.f32.mrf.mxu3 }
 0x1c7   : > { %v1135_v18 = vadd.f32 %v1134_v46, %v5205_v14  ;;  %v1184_v23 = vadd.f32 %v1183_v39, %v5208_v43  ;;  %v4004_v46 = vld [vmem:[%s5911_s4 + $0xd0] sm:$0xff] }
 0x1c8   : > { %2358 = vmatpush.bf16.msrb.mxu1 %v4004_v46 }
 0x1c9   : > { %v1234_v50 = vpop.f32.mrf.mxu0  ;;  %v1283_v10 = vpop.f32.mrf.mxu1 }
 0x1ca   : > { %v1235_v30 = vadd.f32 %v1234_v50, %v5189_v13  ;;  %v1284_v11 = vadd.f32 %v1283_v10, %v5192_v45  ;;  %v1550_v50 = vmax.f32 %v1135_v18, 0.0  ;;  %v1551_v10 = vmax.f32 %v1184_v23, 0.0 }
 0x1cc   : > { %v1560_v9 = vmax.f32 %v1235_v30, 0.0  ;;  %v1561_v62 = vmax.f32 %v1284_v11, 0.0 }
 0x1ce   : > { %v1136_v59 = vpop.f32.mrf.mxu2  ;;  %v1185_v51 = vpop.f32.mrf.mxu3  ;;  %v5313_v41 = vpack.c.bf16 %v1560_v9, %v1552_v15  ;;  %v5315_v42 = vpack.c.bf16 %v1561_v62, %v1553_v34  ;;  %v3979_v34 = vld [vmem:[%s5911_s4 + $0x8] sm:$0xff] }
 0x1cf   : > { %v1137_v7 = vadd.f32 %v1136_v59, %v5205_v14  ;;  %v1186_v6 = vadd.f32 %v1185_v51, %v5208_v43  ;;  %v3987_v9 = vld [vmem:[%s5911_s4 + $0x48] sm:$0xff]  ;;  %2212 = vmatpush.bf16.msrb.mxu2 %v3979_v34 }
 0x1d0   : > { %2261 = vmatpush.bf16.msrb.mxu3 %v3987_v9 }
 0x1d1   : > { %v1558_v30 = vmax.f32 %v1137_v7, 0.0  ;;  %v1559_v11 = vmax.f32 %v1186_v6, 0.0  ;;  %v1237_v0 = vpop.f32.mrf.mxu0  ;;  %v1286_v4 = vpop.f32.mrf.mxu1 }
 0x1d2   : > { %v1238_v18 = vadd.f32 %v1237_v0, %v5189_v13  ;;  %v1287_v23 = vadd.f32 %v1286_v4, %v5192_v45 }
 0x1d3   : > { %1334 = vmatmul.bf16.gmra.mxu2 %v5079_v44  ;;  %1383 = vmatmul.bf16.gmra.mxu3 %v5079_v44  ;;  %v5324_v39 = vpack.c.bf16 %v1558_v30, %v1550_v50  ;;  %v5326_v15 = vpack.c.bf16 %v1559_v11, %v1551_v10  ;;  %v3995_v11 = vld [vmem:[%s5911_s4 + $0x88] sm:$0xff] }
 0x1d4   : > { %1432 = vmatmul.bf16.gmra.mxu0 %v5079_v44  ;;  %1481 = vmatmul.bf16.gmra.mxu1 %v5079_v44  ;;  %v1568_v6 = vmax.f32 %v1238_v18, 0.0  ;;  %v1569_v50 = vmax.f32 %v1287_v23, 0.0 }
 0x1d5   : > { %2310 = vmatpush.bf16.msrb.mxu0 %v3995_v11 }
 0x1d6   : > { %v1139_v62 = vpop.f32.mrf.mxu2  ;;  %v1188_v63 = vpop.f32.mrf.mxu3 }
 0x1d7   : > { %v1140_v46 = vadd.f32 %v1139_v62, %v5205_v14  ;;  %v1189_v0 = vadd.f32 %v1188_v63, %v5208_v43  ;;  %v4003_v62 = vld [vmem:[%s5911_s4 + $0xc8] sm:$0xff] }
 0x1d8   : > { %2359 = vmatpush.bf16.msrb.mxu1 %v4003_v62 }
 0x1d9   : > { %v1239_v59 = vpop.f32.mrf.mxu0  ;;  %v1288_v51 = vpop.f32.mrf.mxu1 }
 0x1da   : > { %v1240_v44 = vadd.f32 %v1239_v59, %v5189_v13  ;;  %v1289_v7 = vadd.f32 %v1288_v51, %v5192_v45  ;;  %v1566_v51 = vmax.f32 %v1140_v46, 0.0 }
 0x1dc   : > { %v1576_v10 = vmax.f32 %v1240_v44, 0.0  ;;  %v1577_v30 = vmax.f32 %v1289_v7, 0.0  ;;  %v1567_v44 = vmax.f32 %v1189_v0, 0.0 }
 0x1de   : > { %v1141_v34 = vpop.f32.mrf.mxu2  ;;  %v1190_v4 = vpop.f32.mrf.mxu3  ;;  %v5345_v9 = vpack.c.bf16 %v1576_v10, %v1568_v6  ;;  %v5347_v59 = vpack.c.bf16 %v1577_v30, %v1569_v50  ;;  %v3978_v50 = vld [vmem:[%s5911_s4] sm:$0xff] }
 0x1df   : > { %v1142_v18 = vadd.f32 %v1141_v34, %v5205_v14  ;;  %v1191_v23 = vadd.f32 %v1190_v4, %v5208_v43  ;;  %v3986_v10 = vld [vmem:[%s5911_s4 + $0x40] sm:$0xff]  ;;  %2213 = vmatpush.bf16.msrb.mxu2 %v3978_v50 }
 0x1e0   : > { %2262 = vmatpush.bf16.msrb.mxu3 %v3986_v10 }
 0x1e1   : > { %v1574_v7 = vmax.f32 %v1142_v18, 0.0  ;;  %v1575_v32 = vmax.f32 %v1191_v23, 0.0  ;;  %v1242_v36 = vpop.f32.mrf.mxu0  ;;  %v1291_v5 = vpop.f32.mrf.mxu1 }
 0x1e2   : > { %v1292_v46 = vadd.f32 %v1291_v5, %v5192_v45 }
 0x1e3   : > { %1339 = vmatmul.bf16.gmra.mxu2 %v5111_v47  ;;  %1388 = vmatmul.bf16.gmra.mxu3 %v5111_v47  ;;  %v5356_v63 = vpack.c.bf16 %v1574_v7, %v1566_v51  ;;  %v5358_v6 = vpack.c.bf16 %v1575_v32, %v1567_v44  ;;  %v1243_v32 = vadd.f32 %v1242_v36, %v5189_v13  ;;  %v3994_v7 = vld [vmem:[%s5911_s4 + $0x80] sm:$0xff] }
 0x1e4   : > { %1437 = vmatmul.bf16.gmra.mxu0 %v5111_v47  ;;  %1486 = vmatmul.bf16.gmra.mxu1 %v5111_v47  ;;  %v1585_v23 = vmax.f32 %v1292_v46, 0.0 }
 0x1e5   : > { %v1584_v18 = vmax.f32 %v1243_v32, 0.0  ;;  %2311 = vmatpush.bf16.msrb.mxu0 %v3994_v7 }
 0x1e6   : > { %v1144_v30 = vpop.f32.mrf.mxu2  ;;  %v1193_v11 = vpop.f32.mrf.mxu3 }
 0x1e7   : > { %v1145_v62 = vadd.f32 %v1144_v30, %v5205_v14  ;;  %v1194_v36 = vadd.f32 %v1193_v11, %v5208_v43 }
 0x1e9   : > { %v1244_v0 = vpop.f32.mrf.mxu0  ;;  %v1293_v34 = vpop.f32.mrf.mxu1 }
 0x1ea   : > { %v1245_v47 = vadd.f32 %v1244_v0, %v5189_v13  ;;  %v1294_v4 = vadd.f32 %v1293_v34, %v5192_v45  ;;  %v4002_v34 = vld [vmem:[%s5911_s4 + $0xc0] sm:$0xff] }
 0x1eb   : > { %2360 = vmatpush.bf16.msrb.mxu1 %v4002_v34 }
 0x1ec   : > { %v1592_v51 = vmax.f32 %v1245_v47, 0.0  ;;  %v1593_v44 = vmax.f32 %v1294_v4, 0.0  ;;  %v1582_v47 = vmax.f32 %v1145_v62, 0.0  ;;  %v1583_v4 = vmax.f32 %v1194_v36, 0.0 }
 0x1ee   : > { %v1146_v50 = vpop.f32.mrf.mxu2  ;;  %v1195_v5 = vpop.f32.mrf.mxu3  ;;  %v5377_v10 = vpack.c.bf16 %v1592_v51, %v1584_v18  ;;  %v5379_v0 = vpack.c.bf16 %v1593_v44, %v1585_v23  ;;  %v4017_v51 = vld [vmem:[%s5911_s4 + $0x138] sm:$0xff] }
 0x1ef   : > { %v1147_v32 = vadd.f32 %v1146_v50, %v5205_v14  ;;  %v1196_v46 = vadd.f32 %v1195_v5, %v5208_v43  ;;  %v4025_v44 = vld [vmem:[%s5911_s4 + $0x178] sm:$0xff]  ;;  %2402 = vmatpush.bf16.msra.mxu2 %v4017_v51 }
 0x1f0   : > { %2451 = vmatpush.bf16.msra.mxu3 %v4025_v44 }
 0x1f1   : > { %v1590_v30 = vmax.f32 %v1147_v32, 0.0  ;;  %v1591_v1 = vmax.f32 %v1196_v46, 0.0  ;;  %v1247_v11 = vpop.f32.mrf.mxu0  ;;  %v1296_v37 = vpop.f32.mrf.mxu1 }
 0x1f2   : > { %v1248_v36 = vadd.f32 %v1247_v11, %v5189_v13 }
 0x1f3   : > { %1344 = vmatmul.bf16.gmra.mxu2 %v5143_v38  ;;  %1393 = vmatmul.bf16.gmra.mxu3 %v5143_v38  ;;  %v5388_v18 = vpack.c.bf16 %v1590_v30, %v1582_v47  ;;  %v5390_v23 = vpack.c.bf16 %v1591_v1, %v1583_v4  ;;  %v1297_v1 = vadd.f32 %v1296_v37, %v5192_v45  ;;  %v4033_v37 = vld [vmem:[%s5911_s4 + $0x1b8] sm:$0xff] }
 0x1f4   : > { %1442 = vmatmul.bf16.gmra.mxu0 %v5143_v38  ;;  %1491 = vmatmul.bf16.gmra.mxu1 %v5143_v38  ;;  %v1600_v46 = vmax.f32 %v1248_v36, 0.0 }
 0x1f5   : > { %v1601_v34 = vmax.f32 %v1297_v1, 0.0  ;;  %2500 = vmatpush.bf16.msra.mxu0 %v4033_v37 }
 0x1f6   : > { %v1149_v7 = vpop.f32.mrf.mxu2  ;;  %v1198_v62 = vpop.f32.mrf.mxu3 }
 0x1f7   : > { %v1150_v30 = vadd.f32 %v1149_v7, %v5205_v14  ;;  %v1199_v33 = vadd.f32 %v1198_v62, %v5208_v43 }
 0x1f9   : > { %v1249_v50 = vpop.f32.mrf.mxu0  ;;  %v1298_v5 = vpop.f32.mrf.mxu1  ;;  %v1598_v1 = vmax.f32 %v1150_v30, 0.0 }
 0x1fa   : > { %v1250_v38 = vadd.f32 %v1249_v50, %v5189_v13  ;;  %v1299_v32 = vadd.f32 %v1298_v5, %v5192_v45  ;;  %v1599_v5 = vmax.f32 %v1199_v33, 0.0  ;;  %v4016_v33 = vld [vmem:[%s5911_s4 + $0x130] sm:$0xff] }
 0x1fb   : > { %2403 = vmatpush.bf16.msra.mxu2 %v4016_v33 }
 0x1fc   : > { %v1608_v47 = vmax.f32 %v1250_v38, 0.0  ;;  %v1609_v4 = vmax.f32 %v1299_v32, 0.0 }
 0x1fe   : > { %v1151_v51 = vpop.f32.mrf.mxu2  ;;  %v1200_v44 = vpop.f32.mrf.mxu3  ;;  %v5409_v11 = vpack.c.bf16 %v1608_v47, %v1600_v46  ;;  %v5411_v49 = vpack.c.bf16 %v1609_v4, %v1601_v34  ;;  %v4041_v46 = vld [vmem:[%s5911_s4 + $0x1f8] sm:$0xff]  ;;  %v4024_v4 = vld [vmem:[%s5911_s4 + $0x170] sm:$0xff] }
 0x1ff   : > { %v1152_v50 = vadd.f32 %v1151_v51, %v5205_v14  ;;  %v1201_v36 = vadd.f32 %v1200_v44, %v5208_v43  ;;  %2549 = vmatpush.bf16.msra.mxu1 %v4041_v46  ;;  %2452 = vmatpush.bf16.msra.mxu3 %v4024_v4  ;;  %v4032_v46 = vld [vmem:[%s5911_s4 + $0x1b0] sm:$0xff] }
 0x200   : > { %2501 = vmatpush.bf16.msra.mxu0 %v4032_v46 }
 0x201   : > { %v1606_v7 = vmax.f32 %v1152_v50, 0.0  ;;  %v1607_v38 = vmax.f32 %v1201_v36, 0.0  ;;  %v1252_v62 = vpop.f32.mrf.mxu0  ;;  %v1301_v32 = vpop.f32.mrf.mxu1 }
 0x202   : > { %v1253_v44 = vadd.f32 %v1252_v62, %v5189_v13  ;;  %v1302_v37 = vadd.f32 %v1301_v32, %v5192_v45 }
 0x203   : > { %1349 = vmatmul.bf16.gmra.mxu2 %v5160_v27  ;;  %1398 = vmatmul.bf16.gmra.mxu3 %v5160_v27  ;;  %v5420_v34 = vpack.c.bf16 %v1606_v7, %v1598_v1  ;;  %v5422_v47 = vpack.c.bf16 %v1607_v38, %v1599_v5 }
 0x204   : > { %1447 = vmatmul.bf16.gmra.mxu0 %v5160_v27  ;;  %1496 = vmatmul.bf16.gmra.mxu1 %v5160_v27  ;;  %v1616_v5 = vmax.f32 %v1253_v44, 0.0  ;;  %v1617_v7 = vmax.f32 %v1302_v37, 0.0 }
 0x206   : > { %v1154_v30 = vpop.f32.mrf.mxu2  ;;  %v1203_v51 = vpop.f32.mrf.mxu3 }
 0x207   : > { %v1155_v33 = vadd.f32 %v1154_v30, %v5205_v14  ;;  %v1204_v62 = vadd.f32 %v1203_v51, %v5208_v43  ;;  %v4040_v30 = vld [vmem:[%s5911_s4 + $0x1f0] sm:$0xff] }
 0x208   : > { %2550 = vmatpush.bf16.msra.mxu1 %v4040_v30 }
 0x209   : > { %v1254_v50 = vpop.f32.mrf.mxu0  ;;  %v1303_v36 = vpop.f32.mrf.mxu1  ;;  %v1614_v37 = vmax.f32 %v1155_v33, 0.0 }
 0x20a   : > { %v1255_v27 = vadd.f32 %v1254_v50, %v5189_v13  ;;  %v1304_v1 = vadd.f32 %v1303_v36, %v5192_v45  ;;  %v1615_v50 = vmax.f32 %v1204_v62, 0.0 }
 0x20c   : > { %v1624_v38 = vmax.f32 %v1255_v27, 0.0  ;;  %v1625_v53 = vmax.f32 %v1304_v1, 0.0 }
 0x20e   : > { %v1156_v4 = vpop.f32.mrf.mxu2  ;;  %v1205_v32 = vpop.f32.mrf.mxu3  ;;  %v5441_v17 = vpack.c.bf16 %v1624_v38, %v1616_v5  ;;  %v5443_v13 = vpack.c.bf16 %v1625_v53, %v1617_v7 }
 0x20f   : > { %v1157_v45 = vadd.f32 %v1156_v4, %v5205_v14  ;;  %v1206_v44 = vadd.f32 %v1205_v32, %v5208_v43  ;;  %v5457_v14 = vperm.slane %v5181_v3, 6  ;;  %v5460_v43 = vperm.slane %v5181_v3, 7 }
 0x211   : > { %v1622_v36 = vmax.f32 %v1157_v45, 0.0  ;;  %v1623_v27 = vmax.f32 %v1206_v44, 0.0  ;;  %v1413_v1 = vpop.f32.mrf.mxu0  ;;  %v1462_v21 = vpop.f32.mrf.mxu1 }
 0x212   : > { %v1414_v38 = vadd.f32 %v1413_v1, %v5457_v14  ;;  %v1463_v46 = vadd.f32 %v1462_v21, %v5460_v43  ;;  %v4031_v21 = vld [vmem:[%s5911_s4 + $0x1a8] sm:$0xff] }
 0x213   : > { %2214 = vmatmul.bf16.vlgmr.msrb.gmra.mxu2 %v5226_v54  ;;  %2263 = vmatmul.bf16.vlgmr.msrb.gmra.mxu3 %v5228_v55  ;;  %v5452_v53 = vpack.c.bf16 %v1622_v36, %v1614_v37  ;;  %v5454_v51 = vpack.c.bf16 %v1623_v27, %v1615_v50  ;;  %v4015_v54 = vld [vmem:[%s5911_s4 + $0x128] sm:$0xff] }
 0x214   : > { %2312 = vmatmul.bf16.vlgmr.msrb.gmra.mxu0 %v5217_v19  ;;  %2361 = vmatmul.bf16.vlgmr.msrb.gmra.mxu1 %v5219_v22  ;;  %v4023_v55 = vld [vmem:[%s5911_s4 + $0x168] sm:$0xff]  ;;  %v5473_v19 = vperm.slane %v5181_v3, 4  ;;  %v5476_v22 = vperm.slane %v5181_v3, 5  ;;  %v1508_v45 = vmax.f32 %v1414_v38, 0.0  ;;  %v1509_v44 = vmax.f32 %v1463_v46, 0.0 }
 0x215   : > { %2404 = vmatpush.bf16.msra.mxu2 %v4015_v54  ;;  %2453 = vmatpush.bf16.msra.mxu3 %v4023_v55 }
 0x216   : > { %v1315_v5 = vpop.f32.mrf.mxu2  ;;  %v1364_v7 = vpop.f32.mrf.mxu3  ;;  %2502 = vmatpush.bf16.msra.mxu0 %v4031_v21 }
 0x217   : > { %v1316_v36 = vadd.f32 %v1315_v5, %v5473_v19  ;;  %v1365_v27 = vadd.f32 %v1364_v7, %v5476_v22  ;;  %v4039_v5 = vld [vmem:[%s5911_s4 + $0x1e8] sm:$0xff] }
 0x218   : > { %2551 = vmatpush.bf16.msra.mxu1 %v4039_v5 }
 0x219   : > { %v1415_v33 = vpop.f32.mrf.mxu0  ;;  %v1464_v62 = vpop.f32.mrf.mxu1  ;;  %v1506_v46 = vmax.f32 %v1316_v36, 0.0 }
 0x21a   : > { %v1416_v4 = vadd.f32 %v1415_v33, %v5457_v14  ;;  %v1465_v32 = vadd.f32 %v1464_v62, %v5460_v43  ;;  %v1507_v33 = vmax.f32 %v1365_v27, 0.0 }
 0x21c   : > { %v1516_v37 = vmax.f32 %v1416_v4, 0.0  ;;  %v1517_v50 = vmax.f32 %v1465_v32, 0.0 }
 0x21e   : > { %v5485_v3 = vpack.c.bf16 %v1516_v37, %v1508_v45  ;;  %v5487_v1 = vpack.c.bf16 %v1517_v50, %v1509_v44  ;;  %v1317_v30 = vpop.f32.mrf.mxu2  ;;  %v1366_v54 = vpop.f32.mrf.mxu3  ;;  %v4014_v44 = vld [vmem:[%s5911_s4 + $0x120] sm:$0xff] }
 0x21f   : > { %v1318_v55 = vadd.f32 %v1317_v30, %v5473_v19  ;;  %v1367_v38 = vadd.f32 %v1366_v54, %v5476_v22  ;;  %v4022_v37 = vld [vmem:[%s5911_s4 + $0x160] sm:$0xff]  ;;  %2405 = vmatpush.bf16.msra.mxu2 %v4014_v44 }
 0x220   : > { %2454 = vmatpush.bf16.msra.mxu3 %v4022_v37 }
 0x221   : > { %v1514_v62 = vmax.f32 %v1318_v55, 0.0  ;;  %v1515_v4 = vmax.f32 %v1367_v38, 0.0  ;;  %v1418_v32 = vpop.f32.mrf.mxu0  ;;  %v1467_v52 = vpop.f32.mrf.mxu1 }
 0x223   : > { %v5494_v7 = vpack.c.bf16 %v1514_v62, %v1506_v46  ;;  %v5496_v45 = vpack.c.bf16 %v1515_v4, %v1507_v33  ;;  %2219 = vmatmul.bf16.gmra.mxu2 %v5260_v40  ;;  %2268 = vmatmul.bf16.gmra.mxu3 %v5262_v35  ;;  %v1419_v40 = vadd.f32 %v1418_v32, %v5457_v14  ;;  %v4030_v46 = vld [vmem:[%s5911_s4 + $0x1a0] sm:$0xff] }
 0x224   : > { %2317 = vmatmul.bf16.gmra.mxu0 %v5249_v2  ;;  %2366 = vmatmul.bf16.gmra.mxu1 %v5251_v31  ;;  %v1468_v35 = vadd.f32 %v1467_v52, %v5460_v43 }
 0x225   : > { %v1524_v30 = vmax.f32 %v1419_v40, 0.0  ;;  %2503 = vmatpush.bf16.msra.mxu0 %v4030_v46 }
 0x226   : > { %v1320_v50 = vpop.f32.mrf.mxu2  ;;  %v1369_v21 = vpop.f32.mrf.mxu3  ;;  %v1525_v54 = vmax.f32 %v1468_v35, 0.0 }
 0x227   : > { %v1321_v33 = vadd.f32 %v1320_v50, %v5473_v19  ;;  %v1370_v62 = vadd.f32 %v1369_v21, %v5476_v22  ;;  %v4038_v50 = vld [vmem:[%s5911_s4 + $0x1e0] sm:$0xff] }
 0x228   : > { %2552 = vmatpush.bf16.msra.mxu1 %v4038_v50 }
 0x229   : > { %v1420_v2 = vpop.f32.mrf.mxu0  ;;  %v1469_v36 = vpop.f32.mrf.mxu1  ;;  %v1522_v40 = vmax.f32 %v1321_v33, 0.0  ;;  %v1523_v35 = vmax.f32 %v1370_v62, 0.0 }
 0x22a   : > { %v1421_v31 = vadd.f32 %v1420_v2, %v5457_v14  ;;  %v1470_v27 = vadd.f32 %v1469_v36, %v5460_v43 }
 0x22c   : > { %v1532_v55 = vmax.f32 %v1421_v31, 0.0  ;;  %v1533_v38 = vmax.f32 %v1470_v27, 0.0 }
 0x22e   : > { %v1322_v4 = vpop.f32.mrf.mxu2  ;;  %v1371_v52 = vpop.f32.mrf.mxu3  ;;  %v5517_v32 = vpack.c.bf16 %v1532_v55, %v1524_v30  ;;  %v5519_v5 = vpack.c.bf16 %v1533_v38, %v1525_v54  ;;  %v4013_v54 = vld [vmem:[%s5911_s4 + $0x118] sm:$0xff] }
 0x22f   : > { %v1323_v44 = vadd.f32 %v1322_v4, %v5473_v19  ;;  %v1372_v37 = vadd.f32 %v1371_v52, %v5476_v22  ;;  %v4021_v55 = vld [vmem:[%s5911_s4 + $0x158] sm:$0xff]  ;;  %2406 = vmatpush.bf16.msra.mxu2 %v4013_v54 }
 0x230   : > { %2455 = vmatpush.bf16.msra.mxu3 %v4021_v55 }
 0x231   : > { %v1530_v2 = vmax.f32 %v1323_v44, 0.0  ;;  %v1531_v36 = vmax.f32 %v1372_v37, 0.0  ;;  %v1423_v31 = vpop.f32.mrf.mxu0  ;;  %v1472_v27 = vpop.f32.mrf.mxu1 }
 0x232   : > { %v1473_v46 = vadd.f32 %v1472_v27, %v5460_v43 }
 0x233   : > { %2224 = vmatmul.bf16.gmra.mxu2 %v5292_v58  ;;  %2273 = vmatmul.bf16.gmra.mxu3 %v5294_v26  ;;  %v5528_v21 = vpack.c.bf16 %v1530_v2, %v1522_v40  ;;  %v5530_v30 = vpack.c.bf16 %v1531_v36, %v1523_v35  ;;  %v1424_v26 = vadd.f32 %v1423_v31, %v5457_v14  ;;  %v4029_v40 = vld [vmem:[%s5911_s4 + $0x198] sm:$0xff] }
 0x234   : > { %2322 = vmatmul.bf16.gmra.mxu0 %v5281_v12  ;;  %2371 = vmatmul.bf16.gmra.mxu1 %v5283_v8  ;;  %v1541_v52 = vmax.f32 %v1473_v46, 0.0 }
 0x235   : > { %v1540_v4 = vmax.f32 %v1424_v26, 0.0  ;;  %2504 = vmatpush.bf16.msra.mxu0 %v4029_v40 }
 0x236   : > { %v1325_v58 = vpop.f32.mrf.mxu2  ;;  %v1374_v38 = vpop.f32.mrf.mxu3 }
 0x237   : > { %v1326_v35 = vadd.f32 %v1325_v58, %v5473_v19  ;;  %v1375_v2 = vadd.f32 %v1374_v38, %v5476_v22  ;;  %v4037_v58 = vld [vmem:[%s5911_s4 + $0x1d8] sm:$0xff] }
 0x238   : > { %2553 = vmatpush.bf16.msra.mxu1 %v4037_v58 }
 0x239   : > { %v1425_v12 = vpop.f32.mrf.mxu0  ;;  %v1474_v33 = vpop.f32.mrf.mxu1  ;;  %v1538_v26 = vmax.f32 %v1326_v35, 0.0  ;;  %v1539_v46 = vmax.f32 %v1375_v2, 0.0 }
 0x23a   : > { %v1426_v8 = vadd.f32 %v1425_v12, %v5457_v14  ;;  %v1475_v62 = vadd.f32 %v1474_v33, %v5460_v43 }
 0x23c   : > { %v1548_v44 = vmax.f32 %v1426_v8, 0.0  ;;  %v1549_v37 = vmax.f32 %v1475_v62, 0.0 }
 0x23e   : > { %v1327_v36 = vpop.f32.mrf.mxu2  ;;  %v1376_v31 = vpop.f32.mrf.mxu3  ;;  %v5549_v27 = vpack.c.bf16 %v1548_v44, %v1540_v4  ;;  %v5551_v50 = vpack.c.bf16 %v1549_v37, %v1541_v52  ;;  %v4012_v52 = vld [vmem:[%s5911_s4 + $0x110] sm:$0xff] }
 0x23f   : > { %v1328_v54 = vadd.f32 %v1327_v36, %v5473_v19  ;;  %v1377_v55 = vadd.f32 %v1376_v31, %v5476_v22  ;;  %v4020_v44 = vld [vmem:[%s5911_s4 + $0x150] sm:$0xff]  ;;  %2407 = vmatpush.bf16.msra.mxu2 %v4012_v52 }
 0x240   : > { %2456 = vmatpush.bf16.msra.mxu3 %v4020_v44 }
 0x241   : > { %v1546_v12 = vmax.f32 %v1328_v54, 0.0  ;;  %v1547_v33 = vmax.f32 %v1377_v55, 0.0  ;;  %v1428_v8 = vpop.f32.mrf.mxu0  ;;  %v1477_v62 = vpop.f32.mrf.mxu1 }
 0x242   : > { %v1478_v40 = vadd.f32 %v1477_v62, %v5460_v43 }
 0x243   : > { %2229 = vmatmul.bf16.gmra.mxu2 %v5324_v39  ;;  %2278 = vmatmul.bf16.gmra.mxu3 %v5326_v15  ;;  %v5560_v38 = vpack.c.bf16 %v1546_v12, %v1538_v26  ;;  %v5562_v4 = vpack.c.bf16 %v1547_v33, %v1539_v46  ;;  %v1429_v15 = vadd.f32 %v1428_v8, %v5457_v14  ;;  %v4028_v26 = vld [vmem:[%s5911_s4 + $0x190] sm:$0xff] }
 0x244   : > { %2327 = vmatmul.bf16.gmra.mxu0 %v5313_v41  ;;  %2376 = vmatmul.bf16.gmra.mxu1 %v5315_v42  ;;  %v1557_v31 = vmax.f32 %v1478_v40, 0.0 }
 0x245   : > { %v1556_v36 = vmax.f32 %v1429_v15, 0.0  ;;  %2505 = vmatpush.bf16.msra.mxu0 %v4028_v26 }
 0x246   : > { %v1330_v39 = vpop.f32.mrf.mxu2  ;;  %v1379_v37 = vpop.f32.mrf.mxu3 }
 0x247   : > { %v1331_v46 = vadd.f32 %v1330_v39, %v5473_v19  ;;  %v1380_v12 = vadd.f32 %v1379_v37, %v5476_v22  ;;  %v4036_v39 = vld [vmem:[%s5911_s4 + $0x1d0] sm:$0xff] }
 0x248   : > { %2554 = vmatpush.bf16.msra.mxu1 %v4036_v39 }
 0x249   : > { %v1430_v41 = vpop.f32.mrf.mxu0  ;;  %v1479_v35 = vpop.f32.mrf.mxu1  ;;  %v1554_v15 = vmax.f32 %v1331_v46, 0.0  ;;  %v1555_v40 = vmax.f32 %v1380_v12, 0.0 }
 0x24a   : > { %v1431_v42 = vadd.f32 %v1430_v41, %v5457_v14  ;;  %v1480_v2 = vadd.f32 %v1479_v35, %v5460_v43 }
 0x24c   : > { %v1564_v54 = vmax.f32 %v1431_v42, 0.0  ;;  %v1565_v55 = vmax.f32 %v1480_v2, 0.0 }
 0x24e   : > { %v1332_v33 = vpop.f32.mrf.mxu2  ;;  %v1381_v8 = vpop.f32.mrf.mxu3  ;;  %v5581_v62 = vpack.c.bf16 %v1564_v54, %v1556_v36  ;;  %v5583_v58 = vpack.c.bf16 %v1565_v55, %v1557_v31  ;;  %v4011_v31 = vld [vmem:[%s5911_s4 + $0x108] sm:$0xff] }
 0x24f   : > { %v1333_v52 = vadd.f32 %v1332_v33, %v5473_v19  ;;  %v1382_v44 = vadd.f32 %v1381_v8, %v5476_v22  ;;  %v4019_v54 = vld [vmem:[%s5911_s4 + $0x148] sm:$0xff]  ;;  %2408 = vmatpush.bf16.msra.mxu2 %v4011_v31 }
 0x250   : > { %2457 = vmatpush.bf16.msra.mxu3 %v4019_v54 }
 0x251   : > { %v1562_v41 = vmax.f32 %v1333_v52, 0.0  ;;  %v1563_v35 = vmax.f32 %v1382_v44, 0.0  ;;  %v1433_v42 = vpop.f32.mrf.mxu0  ;;  %v1482_v2 = vpop.f32.mrf.mxu1 }
 0x252   : > { %v1483_v26 = vadd.f32 %v1482_v2, %v5460_v43 }
 0x253   : > { %2234 = vmatmul.bf16.gmra.mxu2 %v5356_v63  ;;  %2283 = vmatmul.bf16.gmra.mxu3 %v5358_v6  ;;  %v5592_v37 = vpack.c.bf16 %v1562_v41, %v1554_v15  ;;  %v5594_v36 = vpack.c.bf16 %v1563_v35, %v1555_v40  ;;  %v1434_v6 = vadd.f32 %v1433_v42, %v5457_v14  ;;  %v4027_v15 = vld [vmem:[%s5911_s4 + $0x188] sm:$0xff] }
 0x254   : > { %2332 = vmatmul.bf16.gmra.mxu0 %v5345_v9  ;;  %2381 = vmatmul.bf16.gmra.mxu1 %v5347_v59  ;;  %v1573_v8 = vmax.f32 %v1483_v26, 0.0 }
 0x255   : > { %v1572_v33 = vmax.f32 %v1434_v6, 0.0  ;;  %2506 = vmatpush.bf16.msra.mxu0 %v4027_v15 }
 0x256   : > { %v1335_v63 = vpop.f32.mrf.mxu2  ;;  %v1384_v55 = vpop.f32.mrf.mxu3 }
 0x257   : > { %v1336_v40 = vadd.f32 %v1335_v63, %v5473_v19  ;;  %v1385_v41 = vadd.f32 %v1384_v55, %v5476_v22  ;;  %v4035_v63 = vld [vmem:[%s5911_s4 + $0x1c8] sm:$0xff] }
 0x258   : > { %2555 = vmatpush.bf16.msra.mxu1 %v4035_v63 }
 0x259   : > { %v1435_v9 = vpop.f32.mrf.mxu0  ;;  %v1484_v46 = vpop.f32.mrf.mxu1  ;;  %v1570_v6 = vmax.f32 %v1336_v40, 0.0  ;;  %v1571_v26 = vmax.f32 %v1385_v41, 0.0 }
 0x25a   : > { %v1436_v59 = vadd.f32 %v1435_v9, %v5457_v14  ;;  %v1485_v12 = vadd.f32 %v1484_v46, %v5460_v43 }
 0x25c   : > { %v1580_v52 = vmax.f32 %v1436_v59, 0.0  ;;  %v1581_v44 = vmax.f32 %v1485_v12, 0.0 }
 0x25e   : > { %v1337_v35 = vpop.f32.mrf.mxu2  ;;  %v1386_v42 = vpop.f32.mrf.mxu3  ;;  %v5613_v2 = vpack.c.bf16 %v1580_v52, %v1572_v33  ;;  %v5615_v39 = vpack.c.bf16 %v1581_v44, %v1573_v8  ;;  %v4010_v8 = vld [vmem:[%s5911_s4 + $0x100] sm:$0xff] }
 0x25f   : > { %v1338_v31 = vadd.f32 %v1337_v35, %v5473_v19  ;;  %v1387_v54 = vadd.f32 %v1386_v42, %v5476_v22  ;;  %v4018_v52 = vld [vmem:[%s5911_s4 + $0x140] sm:$0xff]  ;;  %2409 = vmatpush.bf16.msra.mxu2 %v4010_v8 }
 0x260   : > { %2458 = vmatpush.bf16.msra.mxu3 %v4018_v52 }
 0x261   : > { %v1578_v9 = vmax.f32 %v1338_v31, 0.0  ;;  %v1579_v46 = vmax.f32 %v1387_v54, 0.0  ;;  %v1438_v59 = vpop.f32.mrf.mxu0  ;;  %v1487_v12 = vpop.f32.mrf.mxu1 }
 0x262   : > { %v1488_v15 = vadd.f32 %v1487_v12, %v5460_v43 }
 0x263   : > { %2239 = vmatmul.bf16.gmra.mxu2 %v5388_v18  ;;  %2288 = vmatmul.bf16.gmra.mxu3 %v5390_v23  ;;  %v5624_v55 = vpack.c.bf16 %v1578_v9, %v1570_v6  ;;  %v5626_v33 = vpack.c.bf16 %v1579_v46, %v1571_v26  ;;  %v1439_v23 = vadd.f32 %v1438_v59, %v5457_v14  ;;  %v4026_v6 = vld [vmem:[%s5911_s4 + $0x180] sm:$0xff] }
 0x264   : > { %2337 = vmatmul.bf16.gmra.mxu0 %v5377_v10  ;;  %2386 = vmatmul.bf16.gmra.mxu1 %v5379_v0  ;;  %v1589_v42 = vmax.f32 %v1488_v15, 0.0 }
 0x265   : > { %v1588_v35 = vmax.f32 %v1439_v23, 0.0  ;;  %2507 = vmatpush.bf16.msra.mxu0 %v4026_v6  ;;  %v4034_v23 = vld [vmem:[%s5911_s4 + $0x1c0] sm:$0xff] }
 0x266   : > { %v1340_v18 = vpop.f32.mrf.mxu2  ;;  %v1389_v44 = vpop.f32.mrf.mxu3  ;;  %2556 = vmatpush.bf16.msra.mxu1 %v4034_v23 }
 0x267   : > { %v1341_v26 = vadd.f32 %v1340_v18, %v5473_v19  ;;  %v1390_v9 = vadd.f32 %v1389_v44, %v5476_v22 }
 0x269   : > { %v1440_v10 = vpop.f32.mrf.mxu0  ;;  %v1489_v40 = vpop.f32.mrf.mxu1  ;;  %v1586_v15 = vmax.f32 %v1341_v26, 0.0 }
 0x26a   : > { %v1441_v0 = vadd.f32 %v1440_v10, %v5457_v14  ;;  %v1490_v41 = vadd.f32 %v1489_v40, %v5460_v43  ;;  %v1587_v10 = vmax.f32 %v1390_v9, 0.0 }
 0x26c   : > { %v1596_v31 = vmax.f32 %v1441_v0, 0.0  ;;  %v1597_v54 = vmax.f32 %v1490_v41, 0.0 }
 0x26e   : > { %v1342_v46 = vpop.f32.mrf.mxu2  ;;  %v1391_v59 = vpop.f32.mrf.mxu3  ;;  %v5645_v12 = vpack.c.bf16 %v1596_v31, %v1588_v35  ;;  %v5647_v63 = vpack.c.bf16 %v1597_v54, %v1589_v42 }
 0x26f   : > { %v1343_v8 = vadd.f32 %v1342_v46, %v5473_v19  ;;  %v1392_v52 = vadd.f32 %v1391_v59, %v5476_v22 }
 0x271   : > { %v1594_v18 = vmax.f32 %v1343_v8, 0.0  ;;  %v1595_v40 = vmax.f32 %v1392_v52, 0.0  ;;  %v1443_v44 = vpop.f32.mrf.mxu0  ;;  %v1492_v0 = vpop.f32.mrf.mxu1 }
 0x272   : > { %v1444_v54 = vadd.f32 %v1443_v44, %v5457_v14  ;;  %v1493_v6 = vadd.f32 %v1492_v0, %v5460_v43 }
 0x273   : > { %2244 = vmatmul.bf16.gmra.mxu2 %v5420_v34  ;;  %2293 = vmatmul.bf16.gmra.mxu3 %v5422_v47  ;;  %v5656_v41 = vpack.c.bf16 %v1594_v18, %v1586_v15  ;;  %v5658_v35 = vpack.c.bf16 %v1595_v40, %v1587_v10 }
 0x274   : > { %2342 = vmatmul.bf16.gmra.mxu0 %v5409_v11  ;;  %2391 = vmatmul.bf16.gmra.mxu1 %v5411_v49  ;;  %v1604_v46 = vmax.f32 %v1444_v54, 0.0  ;;  %v1605_v59 = vmax.f32 %v1493_v6, 0.0 }
 0x276   : > { %v1345_v42 = vpop.f32.mrf.mxu2  ;;  %v1394_v31 = vpop.f32.mrf.mxu3 }
 0x277   : > { %v1346_v11 = vadd.f32 %v1345_v42, %v5473_v19  ;;  %v1395_v49 = vadd.f32 %v1394_v31, %v5476_v22 }
 0x279   : > { %v1445_v26 = vpop.f32.mrf.mxu0  ;;  %v1494_v9 = vpop.f32.mrf.mxu1  ;;  %v1602_v0 = vmax.f32 %v1346_v11, 0.0 }
 0x27a   : > { %v1446_v34 = vadd.f32 %v1445_v26, %v5457_v14  ;;  %v1495_v47 = vadd.f32 %v1494_v9, %v5460_v43  ;;  %v1603_v26 = vmax.f32 %v1395_v49, 0.0 }
 0x27c   : > { %v1612_v8 = vmax.f32 %v1446_v34, 0.0  ;;  %v1613_v52 = vmax.f32 %v1495_v47, 0.0 }
 0x27e   : > { %v1347_v23 = vpop.f32.mrf.mxu2  ;;  %v1396_v15 = vpop.f32.mrf.mxu3  ;;  %v5668_v10 = vpack.c.bf16 %v1612_v8, %v1604_v46  ;;  %v5670_v18 = vpack.c.bf16 %v1613_v52, %v1605_v59 }
 0x27f   : > { %v1348_v40 = vadd.f32 %v1347_v23, %v5473_v19  ;;  %v1397_v44 = vadd.f32 %v1396_v15, %v5476_v22 }
 0x281   : > { %v1610_v54 = vmax.f32 %v1348_v40, 0.0  ;;  %v1611_v6 = vmax.f32 %v1397_v44, 0.0  ;;  %v1448_v9 = vpop.f32.mrf.mxu0  ;;  %v1497_v34 = vpop.f32.mrf.mxu1 }
 0x282   : > { %v1449_v59 = vadd.f32 %v1448_v9, %v5457_v14  ;;  %v1498_v8 = vadd.f32 %v1497_v34, %v5460_v43 }
 0x283   : > { %2249 = vmatmul.bf16.gmra.mxu2 %v5452_v53  ;;  %2298 = vmatmul.bf16.gmra.mxu3 %v5454_v51  ;;  %v5676_v42 = vpack.c.bf16 %v1610_v54, %v1602_v0  ;;  %v5678_v31 = vpack.c.bf16 %v1611_v6, %v1603_v26 }
 0x284   : > { %2347 = vmatmul.bf16.gmra.mxu0 %v5441_v17  ;;  %2396 = vmatmul.bf16.gmra.mxu1 %v5443_v13  ;;  %v1620_v49 = vmax.f32 %v1449_v59, 0.0  ;;  %v1621_v23 = vmax.f32 %v1498_v8, 0.0 }
 0x286   : > { %v1350_v47 = vpop.f32.mrf.mxu2  ;;  %v1399_v46 = vpop.f32.mrf.mxu3 }
 0x287   : > { %v1351_v17 = vadd.f32 %v1350_v47, %v5473_v19  ;;  %v1400_v13 = vadd.f32 %v1399_v46, %v5476_v22 }
 0x289   : > { %v1450_v52 = vpop.f32.mrf.mxu0  ;;  %v1499_v11 = vpop.f32.mrf.mxu1  ;;  %v1618_v9 = vmax.f32 %v1351_v17, 0.0 }
 0x28a   : > { %v1451_v53 = vadd.f32 %v1450_v52, %v5457_v14  ;;  %v1500_v51 = vadd.f32 %v1499_v11, %v5460_v43  ;;  %v1619_v43 = vmax.f32 %v1400_v13, 0.0 }
 0x28c   : > { %v1628_v15 = vmax.f32 %v1451_v53, 0.0  ;;  %v1629_v40 = vmax.f32 %v1500_v51, 0.0 }
 0x28e   : > { %v1352_v44 = vpop.f32.mrf.mxu2  ;;  %v1401_v0 = vpop.f32.mrf.mxu3  ;;  %v5688_v26 = vpack.c.bf16 %v1628_v15, %v1620_v49  ;;  %v5690_v54 = vpack.c.bf16 %v1629_v40, %v1621_v23 }
 0x28f   : > { %v1353_v6 = vadd.f32 %v1352_v44, %v5473_v19  ;;  %v1402_v14 = vadd.f32 %v1401_v0, %v5476_v22 }
 0x291   : > { %v1626_v34 = vmax.f32 %v1353_v6, 0.0  ;;  %v1627_v59 = vmax.f32 %v1402_v14, 0.0  ;;  %v2313_v8 = vpop.f32.mrf.mxu0  ;;  %v2362_v52 = vpop.f32.mrf.mxu1 }
 0x293   : > { %2410 = vmatmul.bf16.vlgmr.msra.gmra.mxu2 %v5494_v7  ;;  %2459 = vmatmul.bf16.vlgmr.msra.gmra.mxu3 %v5496_v45  ;;  %v5696_v47 = vpack.c.bf16 %v1626_v34, %v1618_v9  ;;  %v5698_v46 = vpack.c.bf16 %v1627_v59, %v1619_v43 }
 0x294   : > { %2508 = vmatmul.bf16.vlgmr.msra.gmra.mxu0 %v5485_v3  ;;  %2557 = vmatmul.bf16.vlgmr.msra.gmra.mxu1 %v5487_v1 }
 0x296   : > { %v2215_v19 = vpop.f32.mrf.mxu2  ;;  %v2264_v22 = vpop.f32.mrf.mxu3 }
 0x297   : > { %v2265_v11 = vadd.f32 %v2264_v22, %v2215_v19 }
 0x299   : > { %v2314_v53 = vadd.f32 %v2313_v8, %v2265_v11  ;;  %v2315_v51 = vpop.f32.mrf.mxu0  ;;  %v2364_v49 = vpop.f32.mrf.mxu1 }
 0x29b   : > { %v5702_v23 = vadd.f32 %v2362_v52, %v2314_v53 }
 0x29e   : > { %v2217_v15 = vpop.f32.mrf.mxu2  ;;  %v2266_v7 = vpop.f32.mrf.mxu3 }
 0x29f   : > { %v2267_v40 = vadd.f32 %v2266_v7, %v2217_v15 }
 0x2a1   : > { %v2316_v45 = vadd.f32 %v2315_v51, %v2267_v40  ;;  %v2318_v17 = vpop.f32.mrf.mxu0  ;;  %v2367_v13 = vpop.f32.mrf.mxu1 }
 0x2a3   : > { %2415 = vmatmul.bf16.gmra.mxu2 %v5528_v21  ;;  %2464 = vmatmul.bf16.gmra.mxu3 %v5530_v30  ;;  %v5706_v3 = vadd.f32 %v2364_v49, %v2316_v45 }
 0x2a4   : > { %2513 = vmatmul.bf16.gmra.mxu0 %v5517_v32  ;;  %2562 = vmatmul.bf16.gmra.mxu1 %v5519_v5 }
 0x2a6   : > { %v2220_v1 = vpop.f32.mrf.mxu2  ;;  %v2269_v44 = vpop.f32.mrf.mxu3 }
 0x2a7   : > { %v2270_v0 = vadd.f32 %v2269_v44, %v2220_v1 }
 0x2a9   : > { %v2319_v6 = vadd.f32 %v2318_v17, %v2270_v0  ;;  %v2320_v14 = vpop.f32.mrf.mxu0  ;;  %v2369_v9 = vpop.f32.mrf.mxu1 }
 0x2ab   : > { %v5710_v43 = vadd.f32 %v2367_v13, %v2319_v6 }
 0x2ae   : > { %v2222_v34 = vpop.f32.mrf.mxu2  ;;  %v2271_v59 = vpop.f32.mrf.mxu3 }
 0x2af   : > { %v2272_v8 = vadd.f32 %v2271_v59, %v2222_v34 }
 0x2b1   : > { %v2321_v21 = vadd.f32 %v2320_v14, %v2272_v8  ;;  %v2323_v52 = vpop.f32.mrf.mxu0  ;;  %v2372_v30 = vpop.f32.mrf.mxu1 }
 0x2b3   : > { %2420 = vmatmul.bf16.gmra.mxu2 %v5560_v38  ;;  %2469 = vmatmul.bf16.gmra.mxu3 %v5562_v4  ;;  %v5714_v32 = vadd.f32 %v2369_v9, %v2321_v21 }
 0x2b4   : > { %2518 = vmatmul.bf16.gmra.mxu0 %v5549_v27  ;;  %2567 = vmatmul.bf16.gmra.mxu1 %v5551_v50 }
 0x2b6   : > { %v2225_v5 = vpop.f32.mrf.mxu2  ;;  %v2274_v19 = vpop.f32.mrf.mxu3 }
 0x2b7   : > { %v2275_v22 = vadd.f32 %v2274_v19, %v2225_v5 }
 0x2b9   : > { %v2324_v11 = vadd.f32 %v2323_v52, %v2275_v22  ;;  %v2325_v53 = vpop.f32.mrf.mxu0  ;;  %v2374_v51 = vpop.f32.mrf.mxu1 }
 0x2bb   : > { %v5718_v49 = vadd.f32 %v2372_v30, %v2324_v11 }
 0x2be   : > { %v2227_v15 = vpop.f32.mrf.mxu2  ;;  %v2276_v7 = vpop.f32.mrf.mxu3 }
 0x2bf   : > { %v2277_v40 = vadd.f32 %v2276_v7, %v2227_v15 }
 0x2c1   : > { %v2326_v38 = vadd.f32 %v2325_v53, %v2277_v40  ;;  %v2328_v45 = vpop.f32.mrf.mxu0  ;;  %v2377_v4 = vpop.f32.mrf.mxu1 }
 0x2c3   : > { %2425 = vmatmul.bf16.gmra.mxu2 %v5592_v37  ;;  %2474 = vmatmul.bf16.gmra.mxu3 %v5594_v36  ;;  %v5722_v27 = vadd.f32 %v2374_v51, %v2326_v38 }
 0x2c4   : > { %2523 = vmatmul.bf16.gmra.mxu0 %v5581_v62  ;;  %2572 = vmatmul.bf16.gmra.mxu1 %v5583_v58 }
 0x2c6   : > { %v2230_v50 = vpop.f32.mrf.mxu2  ;;  %v2279_v17 = vpop.f32.mrf.mxu3 }
 0x2c7   : > { %v2280_v13 = vadd.f32 %v2279_v17, %v2230_v50 }
 0x2c9   : > { %v2329_v1 = vadd.f32 %v2328_v45, %v2280_v13  ;;  %v2330_v44 = vpop.f32.mrf.mxu0  ;;  %v2379_v0 = vpop.f32.mrf.mxu1 }
 0x2cb   : > { %v5726_v6 = vadd.f32 %v2377_v4, %v2329_v1 }
 0x2ce   : > { %v2232_v14 = vpop.f32.mrf.mxu2  ;;  %v2281_v9 = vpop.f32.mrf.mxu3 }
 0x2cf   : > { %v2282_v34 = vadd.f32 %v2281_v9, %v2232_v14 }
 0x2d1   : > { %v2331_v37 = vadd.f32 %v2330_v44, %v2282_v34  ;;  %v2333_v59 = vpop.f32.mrf.mxu0  ;;  %v2382_v36 = vpop.f32.mrf.mxu1 }
 0x2d3   : > { %2430 = vmatmul.bf16.gmra.mxu2 %v5624_v55  ;;  %2479 = vmatmul.bf16.gmra.mxu3 %v5626_v33  ;;  %v5730_v62 = vadd.f32 %v2379_v0, %v2331_v37 }
 0x2d4   : > { %2528 = vmatmul.bf16.gmra.mxu0 %v5613_v2  ;;  %2577 = vmatmul.bf16.gmra.mxu1 %v5615_v39 }
 0x2d6   : > { %v2235_v58 = vpop.f32.mrf.mxu2  ;;  %v2284_v8 = vpop.f32.mrf.mxu3 }
 0x2d7   : > { %v2285_v21 = vadd.f32 %v2284_v8, %v2235_v58 }
 0x2d9   : > { %v2334_v52 = vadd.f32 %v2333_v59, %v2285_v21  ;;  %v2335_v30 = vpop.f32.mrf.mxu0  ;;  %v2384_v5 = vpop.f32.mrf.mxu1 }
 0x2db   : > { %v5734_v19 = vadd.f32 %v2382_v36, %v2334_v52 }
 0x2de   : > { %v2237_v22 = vpop.f32.mrf.mxu2  ;;  %v2286_v11 = vpop.f32.mrf.mxu3 }
 0x2df   : > { %v2287_v53 = vadd.f32 %v2286_v11, %v2237_v22 }
 0x2e1   : > { %v2336_v55 = vadd.f32 %v2335_v30, %v2287_v53  ;;  %v2338_v51 = vpop.f32.mrf.mxu0  ;;  %v2387_v33 = vpop.f32.mrf.mxu1 }
 0x2e3   : > { %2435 = vmatmul.bf16.gmra.mxu2 %v5656_v41  ;;  %2484 = vmatmul.bf16.gmra.mxu3 %v5658_v35  ;;  %v5738_v2 = vadd.f32 %v2384_v5, %v2336_v55 }
 0x2e4   : > { %2533 = vmatmul.bf16.gmra.mxu0 %v5645_v12  ;;  %2582 = vmatmul.bf16.gmra.mxu1 %v5647_v63 }
 0x2e6   : > { %v2240_v39 = vpop.f32.mrf.mxu2  ;;  %v2289_v15 = vpop.f32.mrf.mxu3 }
 0x2e7   : > { %v2290_v7 = vadd.f32 %v2289_v15, %v2240_v39 }
 0x2e9   : > { %v2339_v40 = vadd.f32 %v2338_v51, %v2290_v7  ;;  %v2340_v38 = vpop.f32.mrf.mxu0  ;;  %v2389_v45 = vpop.f32.mrf.mxu1 }
 0x2eb   : > { %v5742_v4 = vadd.f32 %v2387_v33, %v2339_v40 }
 0x2ee   : > { %v2242_v50 = vpop.f32.mrf.mxu2  ;;  %v2291_v17 = vpop.f32.mrf.mxu3 }
 0x2ef   : > { %v2292_v13 = vadd.f32 %v2291_v17, %v2242_v50 }
 0x2f1   : > { %v2341_v41 = vadd.f32 %v2340_v38, %v2292_v13  ;;  %v2343_v1 = vpop.f32.mrf.mxu0  ;;  %v2392_v35 = vpop.f32.mrf.mxu1 }
 0x2f3   : > { %2440 = vmatmul.bf16.gmra.mxu2 %v5676_v42  ;;  %2489 = vmatmul.bf16.gmra.mxu3 %v5678_v31  ;;  %v5746_v12 = vadd.f32 %v2389_v45, %v2341_v41 }
 0x2f4   : > { %2538 = vmatmul.bf16.gmra.mxu0 %v5668_v10  ;;  %2587 = vmatmul.bf16.gmra.mxu1 %v5670_v18 }
 0x2f6   : > { %v2245_v63 = vpop.f32.mrf.mxu2  ;;  %v2294_v44 = vpop.f32.mrf.mxu3 }
 0x2f7   : > { %v2295_v0 = vadd.f32 %v2294_v44, %v2245_v63 }
 0x2f9   : > { %v2344_v14 = vadd.f32 %v2343_v1, %v2295_v0  ;;  %v2345_v9 = vpop.f32.mrf.mxu0  ;;  %v2394_v34 = vpop.f32.mrf.mxu1 }
 0x2fb   : > { %v5750_v37 = vadd.f32 %v2392_v35, %v2344_v14 }
 0x2fe   : > { %v2247_v59 = vpop.f32.mrf.mxu2  ;;  %v2296_v36 = vpop.f32.mrf.mxu3 }
 0x2ff   : > { %v2297_v58 = vadd.f32 %v2296_v36, %v2247_v59 }
 0x301   : > { %v2346_v42 = vadd.f32 %v2345_v9, %v2297_v58  ;;  %v2348_v8 = vpop.f32.mrf.mxu0  ;;  %v2397_v31 = vpop.f32.mrf.mxu1 }
 0x303   : > { %2445 = vmatmul.bf16.gmra.mxu2 %v5696_v47  ;;  %2494 = vmatmul.bf16.gmra.mxu3 %v5698_v46  ;;  %v5754_v10 = vadd.f32 %v2394_v34, %v2346_v42 }
 0x304   : > { %2543 = vmatmul.bf16.gmra.mxu0 %v5688_v26  ;;  %2592 = vmatmul.bf16.gmra.mxu1 %v5690_v54 }
 0x306   : > { %v2250_v18 = vpop.f32.mrf.mxu2  ;;  %v2299_v21 = vpop.f32.mrf.mxu3 }
 0x307   : > { %v2300_v52 = vadd.f32 %v2299_v21, %v2250_v18 }
 0x309   : > { %v2349_v30 = vadd.f32 %v2348_v8, %v2300_v52  ;;  %v2350_v5 = vpop.f32.mrf.mxu0  ;;  %v2399_v22 = vpop.f32.mrf.mxu1 }
 0x30b   : > { %v5758_v11 = vadd.f32 %v2397_v31, %v2349_v30 }
 0x30e   : > { %v2252_v53 = vpop.f32.mrf.mxu2  ;;  %v2301_v55 = vpop.f32.mrf.mxu3 }
 0x30f   : > { %v2302_v51 = vadd.f32 %v2301_v55, %v2252_v53 }
 0x311   : > { %v2351_v47 = vadd.f32 %v2350_v5, %v2302_v51  ;;  %v2509_v33 = vpop.f32.mrf.mxu0  ;;  %v2558_v46 = vpop.f32.mrf.mxu1 }
 0x313   : > { %v5760_v39 = vadd.f32 %v2399_v22, %v2351_v47 }
 0x316   : > { %v2411_v15 = vpop.f32.mrf.mxu2  ;;  %v2460_v26 = vpop.f32.mrf.mxu3 }
 0x317   : > { %v2412_v54 = vadd.f32 %v2411_v15, %v5702_v23 }
 0x319   : > { %v2511_v7 = vpop.f32.mrf.mxu0  ;;  %v2560_v40 = vpop.f32.mrf.mxu1  ;;  %v2461_v38 = vadd.f32 %v2460_v26, %v2412_v54 }
 0x31b   : > { %v2510_v17 = vadd.f32 %v2509_v33, %v2461_v38 }
 0x31d   : > { %v2559_v63 = vadd.f32 %v2558_v46, %v2510_v17 }
 0x31e   : > { %v2413_v45 = vpop.f32.mrf.mxu2  ;;  %v2462_v50 = vpop.f32.mrf.mxu3 }
 0x31f   : > { %v2414_v13 = vadd.f32 %v2413_v45, %v5706_v3  ;;  %v2598_v23 = vmul.f32 %v2559_v63, %v4596_v56 }
 0x321   : > { %v2463_v41 = vadd.f32 %v2462_v50, %v2414_v13  ;;  %v2514_v1 = vpop.f32.mrf.mxu0  ;;  %v2563_v35 = vpop.f32.mrf.mxu1 }
 0x323   : > { %v2512_v44 = vadd.f32 %v2511_v7, %v2463_v41 }
 0x325   : > { %v2561_v0 = vadd.f32 %v2560_v40, %v2512_v44 }
 0x326   : > { %v2416_v14 = vpop.f32.mrf.mxu2  ;;  %v2465_v9 = vpop.f32.mrf.mxu3 }
 0x327   : > { %v2599_v34 = vmul.f32 %v2561_v0, %v4598_v24  ;;  %v2417_v59 = vadd.f32 %v2416_v14, %v5710_v43 }
 0x329   : > { %v4061_v36 = vpack.c.bf16 %v2599_v34, %v2598_v23  ;;  %v2516_v58 = vpop.f32.mrf.mxu0  ;;  %v2565_v42 = vpop.f32.mrf.mxu1  ;;  %v2466_v3 = vadd.f32 %v2465_v9, %v2417_v59 }
 0x32b   : > { %4062 = vst [vmem:[%s5769_s22] sm:$0xff] %v4061_v36   ;;  %v2515_v18 = vadd.f32 %v2514_v1, %v2466_v3 }
 0x32d   : > { %v2564_v22 = vadd.f32 %v2563_v35, %v2515_v18 }
 0x32e   : > { %v2418_v8 = vpop.f32.mrf.mxu2  ;;  %v2467_v31 = vpop.f32.mrf.mxu3 }
 0x32f   : > { %v2419_v21 = vadd.f32 %v2418_v8, %v5714_v32  ;;  %v2600_v47 = vmul.f32 %v2564_v22, %v4600_v60 }
 0x331   : > { %v2468_v52 = vadd.f32 %v2467_v31, %v2419_v21  ;;  %v2519_v30 = vpop.f32.mrf.mxu0  ;;  %v2568_v5 = vpop.f32.mrf.mxu1 }
 0x333   : > { %v2517_v53 = vadd.f32 %v2516_v58, %v2468_v52 }
 0x335   : > { %v2566_v43 = vadd.f32 %v2565_v42, %v2517_v53 }
 0x336   : > { %v2421_v55 = vpop.f32.mrf.mxu2  ;;  %v2470_v51 = vpop.f32.mrf.mxu3 }
 0x337   : > { %v2601_v33 = vmul.f32 %v2566_v43, %v4602_v61  ;;  %v2422_v46 = vadd.f32 %v2421_v55, %v5718_v49 }
 0x339   : > { %v4066_v15 = vpack.c.bf16 %v2601_v33, %v2600_v47  ;;  %v2521_v26 = vpop.f32.mrf.mxu0  ;;  %v2570_v54 = vpop.f32.mrf.mxu1  ;;  %v2471_v7 = vadd.f32 %v2470_v51, %v2422_v46 }
 0x33b   : > { %4098 = vst [vmem:[%s5769_s22 + $0x8] sm:$0xff] %v4066_v15   ;;  %v2520_v38 = vadd.f32 %v2519_v30, %v2471_v7 }
 0x33d   : > { %v2569_v41 = vadd.f32 %v2568_v5, %v2520_v38 }
 0x33e   : > { %v2423_v32 = vpop.f32.mrf.mxu2  ;;  %v2472_v40 = vpop.f32.mrf.mxu3 }
 0x33f   : > { %v2424_v45 = vadd.f32 %v2423_v32, %v5722_v27  ;;  %v2602_v49 = vmul.f32 %v2569_v41, %v4604_v25 }
 0x341   : > { %v2473_v50 = vadd.f32 %v2472_v40, %v2424_v45  ;;  %v2524_v17 = vpop.f32.mrf.mxu0  ;;  %v2573_v13 = vpop.f32.mrf.mxu1 }
 0x343   : > { %v2522_v1 = vadd.f32 %v2521_v26, %v2473_v50 }
 0x345   : > { %v2571_v35 = vadd.f32 %v2570_v54, %v2522_v1 }
 0x346   : > { %v2426_v63 = vpop.f32.mrf.mxu2  ;;  %v2475_v44 = vpop.f32.mrf.mxu3 }
 0x347   : > { %v2603_v0 = vmul.f32 %v2571_v35, %v4606_v57  ;;  %v2427_v14 = vadd.f32 %v2426_v63, %v5726_v6 }
 0x349   : > { %v4071_v9 = vpack.c.bf16 %v2603_v0, %v2602_v49  ;;  %v2526_v23 = vpop.f32.mrf.mxu0  ;;  %v2575_v34 = vpop.f32.mrf.mxu1  ;;  %v2476_v59 = vadd.f32 %v2475_v44, %v2427_v14 }
 0x34b   : > { %4099 = vst [vmem:[%s5769_s22 + $0x10] sm:$0xff] %v4071_v9   ;;  %v2525_v58 = vadd.f32 %v2524_v17, %v2476_v59 }
 0x34d   : > { %v2574_v18 = vadd.f32 %v2573_v13, %v2525_v58 }
 0x34e   : > { %v2428_v27 = vpop.f32.mrf.mxu2  ;;  %v2477_v36 = vpop.f32.mrf.mxu3 }
 0x34f   : > { %v2429_v42 = vadd.f32 %v2428_v27, %v5730_v62  ;;  %v2604_v6 = vmul.f32 %v2574_v18, %v4608_v16 }
 0x351   : > { %v2478_v3 = vadd.f32 %v2477_v36, %v2429_v42  ;;  %v2529_v8 = vpop.f32.mrf.mxu0  ;;  %v2578_v31 = vpop.f32.mrf.mxu1  ;;  %v5957_v42 = vld [vmem:[#allocation39_spill] sm:$0xff] }
 0x353   : > { %v2527_v21 = vadd.f32 %v2526_v23, %v2478_v3 }
 0x355   : > { %v2576_v52 = vadd.f32 %v2575_v34, %v2527_v21 }
 0x356   : > { %v2431_v30 = vpop.f32.mrf.mxu2  ;;  %v2480_v5 = vpop.f32.mrf.mxu3 }
 0x357   : > { %v2605_v22 = vmul.f32 %v2576_v52, %v4610_v28  ;;  %v2432_v53 = vadd.f32 %v2431_v30, %v5734_v19 }
 0x359   : > { %v4076_v43 = vpack.c.bf16 %v2605_v22, %v2604_v6  ;;  %v2531_v55 = vpop.f32.mrf.mxu0  ;;  %v2580_v51 = vpop.f32.mrf.mxu1  ;;  %v2481_v47 = vadd.f32 %v2480_v5, %v2432_v53 }
 0x35b   : > { %4100 = vst [vmem:[%s5769_s22 + $0x18] sm:$0xff] %v4076_v43   ;;  %v2530_v46 = vadd.f32 %v2529_v8, %v2481_v47 }
 0x35d   : > { %v2579_v32 = vadd.f32 %v2578_v31, %v2530_v46 }
 0x35e   : > { %v2433_v62 = vpop.f32.mrf.mxu2  ;;  %v2482_v33 = vpop.f32.mrf.mxu3 }
 0x35f   : > { %v2434_v15 = vadd.f32 %v2433_v62, %v5738_v2  ;;  %v2606_v19 = vmul.f32 %v2579_v32, %v4612_v29  ;;  %v5958_v62 = vld [vmem:[#allocation40_spill] sm:$0xff] }
 0x361   : > { %v2483_v26 = vadd.f32 %v2482_v33, %v2434_v15  ;;  %v2534_v54 = vpop.f32.mrf.mxu0  ;;  %v2583_v7 = vpop.f32.mrf.mxu1 }
 0x363   : > { %v2532_v40 = vadd.f32 %v2531_v55, %v2483_v26 }
 0x365   : > { %v2581_v38 = vadd.f32 %v2580_v51, %v2532_v40 }
 0x366   : > { %v2436_v45 = vpop.f32.mrf.mxu2  ;;  %v2485_v50 = vpop.f32.mrf.mxu3 }
 0x367   : > { %v2607_v17 = vmul.f32 %v2581_v38, %v4614_v20  ;;  %v2437_v13 = vadd.f32 %v2436_v45, %v5742_v4 }
 0x369   : > { %v4081_v41 = vpack.c.bf16 %v2607_v17, %v2606_v19  ;;  %v2536_v1 = vpop.f32.mrf.mxu0  ;;  %v2486_v35 = vadd.f32 %v2485_v50, %v2437_v13  ;;  %v2585_v63 = vpop.f32.mrf.mxu1 }
 0x36b   : > { %4101 = vst [vmem:[%s5769_s22 + $0x20] sm:$0xff] %v4081_v41   ;;  %v2535_v49 = vadd.f32 %v2534_v54, %v2486_v35  ;;  %v5960_v35 = vld [vmem:[#allocation42_spill] sm:$0xff] }
 0x36d   : > { %v2584_v9 = vadd.f32 %v2583_v7, %v2535_v49 }
 0x36e   : > { %v2438_v2 = vpop.f32.mrf.mxu2  ;;  %v2487_v44 = vpop.f32.mrf.mxu3 }
 0x36f   : > { %v2439_v0 = vadd.f32 %v2438_v2, %v5746_v12  ;;  %v2608_v4 = vmul.f32 %v2584_v9, %v4616_v48 }
 0x371   : > { %v2488_v14 = vadd.f32 %v2487_v44, %v2439_v0  ;;  %v2539_v34 = vpop.f32.mrf.mxu0  ;;  %v2588_v27 = vpop.f32.mrf.mxu1 }
 0x373   : > { %v2537_v23 = vadd.f32 %v2536_v1, %v2488_v14 }
 0x375   : > { %v2586_v59 = vadd.f32 %v2585_v63, %v2537_v23 }
 0x376   : > { %v2441_v36 = vpop.f32.mrf.mxu2  ;;  %v2490_v58 = vpop.f32.mrf.mxu3 }
 0x377   : > { %v2609_v3 = vmul.f32 %v2586_v59, %v5957_v42  ;;  %v2442_v8 = vadd.f32 %v2441_v36, %v5750_v37  ;;  %v5959_v37 = vld [vmem:[#allocation41_spill] sm:$0xff] }
 0x379   : > { %v4086_v31 = vpack.c.bf16 %v2609_v3, %v2608_v4  ;;  %v2491_v18 = vadd.f32 %v2490_v58, %v2442_v8  ;;  %v2541_v21 = vpop.f32.mrf.mxu0  ;;  %v2590_v6 = vpop.f32.mrf.mxu1 }
 0x37b   : > { %4102 = vst [vmem:[%s5769_s22 + $0x28] sm:$0xff] %v4086_v31   ;;  %v2540_v30 = vadd.f32 %v2539_v34, %v2491_v18 }
 0x37d   : > { %v2589_v53 = vadd.f32 %v2588_v27, %v2540_v30 }
 0x37e   : > { %v2443_v52 = vpop.f32.mrf.mxu2  ;;  %v2492_v12 = vpop.f32.mrf.mxu3 }
 0x37f   : > { %v2444_v5 = vadd.f32 %v2443_v52, %v5754_v10  ;;  %v2610_v33 = vmul.f32 %v2589_v53, %v5958_v62 }
 0x381   : > { %v2493_v22 = vadd.f32 %v2492_v12, %v2444_v5  ;;  %v2544_v26 = vpop.f32.mrf.mxu0  ;;  %v2593_v7 = vpop.f32.mrf.mxu1 }
 0x383   : > { %v2542_v43 = vadd.f32 %v2541_v21, %v2493_v22 }
 0x385   : > { %v2591_v55 = vadd.f32 %v2590_v6, %v2542_v43 }
 0x386   : > { %v2446_v51 = vpop.f32.mrf.mxu2  ;;  %v2495_v47 = vpop.f32.mrf.mxu3 }
 0x387   : > { %v2611_v46 = vmul.f32 %v2591_v55, %v5959_v37  ;;  %v2447_v15 = vadd.f32 %v2446_v51, %v5758_v11  ;;  %v5961_v11 = vld [vmem:[#allocation43_spill] sm:$0xff] }
 0x389   : > { %v4091_v54 = vpack.c.bf16 %v2611_v46, %v2610_v33  ;;  %v2496_v32 = vadd.f32 %v2495_v47, %v2447_v15  ;;  %v2546_v19 = vpop.f32.mrf.mxu0  ;;  %v2595_v41 = vpop.f32.mrf.mxu1 }
 0x38b   : > { %4103 = vst [vmem:[%s5769_s22 + $0x30] sm:$0xff] %v4091_v54   ;;  %v2545_v40 = vadd.f32 %v2544_v26, %v2496_v32 }
 0x38d   : > { %v2594_v17 = vadd.f32 %v2593_v7, %v2545_v40 }
 0x38e   : > { %v2448_v10 = vpop.f32.mrf.mxu2  ;;  %v2497_v45 = vpop.f32.mrf.mxu3 }
 0x38f   : > { %v2449_v38 = vadd.f32 %v2448_v10, %v5760_v39  ;;  %v2612_v63 = vmul.f32 %v2594_v17, %v5960_v35 }
 0x391   : > { %v2498_v50 = vadd.f32 %v2497_v45, %v2449_v38 }
 0x393   : > { %v2547_v13 = vadd.f32 %v2546_v19, %v2498_v50 }
 0x395   : > { %v2596_v1 = vadd.f32 %v2595_v41, %v2547_v13 }
 0x397   : > { %v2613_v2 = vmul.f32 %v2596_v1, %v5961_v11 }
 0x399   : > { %v4096_v44 = vpack.c.bf16 %v2613_v2, %v2612_v63 }
 0x39b   : > { %4104 = vst [vmem:[%s5769_s22 + $0x38] sm:$0xff] %v4096_v44  }
 0x39c PF: > { %p3733_p10 = scmp.ne.s32.totalorder %s4206_s25, 1 }
 0x39e   : > { %2651 = sbr.rel (%p3733_p10) target bundleno = 1159 (0x487), region = 75 }
 0x3a3   : > { %v4049_v49 = vld [vmem:[#allocation3 + $0x38] sm:$0xff]  ;;  %v4048_v39 = vld [vmem:[#allocation3 + $0x30] sm:$0xff]  ;;  %v4047_v9 = vld [vmem:[#allocation3 + $0x28] sm:$0xff] }
 0x3a4   : > { %v4057_v0 = vld [vmem:[#allocation3 + $0x78] sm:$0xff]  ;;  %2860 = vmatpush.bf16.msra.mxu0 %v4049_v49  ;;  %4121 = vmatpush.bf16.msra.mxu2 %v4049_v49  ;;  %v4056_v14 = vld [vmem:[#allocation3 + $0x70] sm:$0xff]  ;;  %v4055_v23 = vld [vmem:[#allocation3 + $0x68] sm:$0xff] }
 0x3a5   : > { %2909 = vmatpush.bf16.msra.mxu1 %v4057_v0  ;;  %4129 = vmatpush.bf16.msra.mxu3 %v4057_v0  ;;  %v4046_v34 = vld [vmem:[#allocation3 + $0x20] sm:$0xff]  ;;  %v4045_v27 = vld [vmem:[#allocation3 + $0x18] sm:$0xff]  ;;  %v4044_v58 = vld [vmem:[#allocation3 + $0x10] sm:$0xff] }
 0x3a6   : > { %v4054_v59 = vld [vmem:[#allocation3 + $0x60] sm:$0xff]  ;;  %v4053_v36 = vld [vmem:[#allocation3 + $0x58] sm:$0xff]  ;;  %v4052_v4 = vld [vmem:[#allocation3 + $0x50] sm:$0xff] }
 0x3a7   : > { %v4043_v42 = vld [vmem:[#allocation3 + $0x8] sm:$0xff]  ;;  %v4042_v8 = vld [vmem:[#allocation3] sm:$0xff]  ;;  %v5963_v21 = vld [vmem:[#allocation10_spill] sm:$0xff] }
 0x3a8   : > { %2861 = vmatpush.bf16.msra.mxu0 %v4048_v39  ;;  %4122 = vmatpush.bf16.msra.mxu2 %v4048_v39  ;;  %v4051_v3 = vld [vmem:[#allocation3 + $0x48] sm:$0xff]  ;;  %v4050_v31 = vld [vmem:[#allocation3 + $0x40] sm:$0xff]  ;;  %v5965_v30 = vld [vmem:[#allocation26_spill] sm:$0xff] }
 0x3a9   : > { %2910 = vmatpush.bf16.msra.mxu1 %v4056_v14  ;;  %4130 = vmatpush.bf16.msra.mxu3 %v4056_v14  ;;  %v5962_v18 = vld [vmem:[#allocation8_spill] sm:$0xff]  ;;  %v5966_v6 = vld [vmem:[#allocation9_spill] sm:$0xff]  ;;  %v5967_v22 = vld [vmem:[#allocation7_spill] sm:$0xff] }
 0x3aa   : > { %v3737_v52 = vor.u32 %v5963_v21, %v5962_v18  ;;  %v5964_v12 = vld [vmem:[#allocation24_spill] sm:$0xff]  ;;  %v3741_v53 = vor.u32 %v5967_v22, %v5966_v6  ;;  %v5968_v43 = vld [vmem:[#allocation25_spill] sm:$0xff]  ;;  %v5969_v55 = vld [vmem:[#allocation23_spill] sm:$0xff] }
 0x3ab   : > { %v3769_v5 = vor.u32 %v5965_v30, %v5964_v12  ;;  %v3773_v51 = vor.u32 %v5969_v55, %v5968_v43  ;;  %v5970_v47 = vld [vmem:[#allocation12_spill] sm:$0xff]  ;;  %v5971_v62 = vld [vmem:[#allocation14_spill] sm:$0xff]  ;;  %v5974_v26 = vld [vmem:[#allocation13_spill] sm:$0xff] }
 0x3ac   : > { %2862 = vmatpush.bf16.msra.mxu0 %v4047_v9  ;;  %4123 = vmatpush.bf16.msra.mxu2 %v4047_v9  ;;  %v3745_v33 = vor.u32 %v5971_v62, %v5970_v47  ;;  %v5972_v37 = vld [vmem:[#allocation28_spill] sm:$0xff]  ;;  %v5973_v46 = vld [vmem:[#allocation30_spill] sm:$0xff]  ;;  %v5975_v54 = vld [vmem:[#allocation11_spill] sm:$0xff] }
 0x3ad   : > { %2911 = vmatpush.bf16.msra.mxu1 %v4055_v23  ;;  %4131 = vmatpush.bf16.msra.mxu3 %v4055_v23  ;;  %v3777_v15 = vor.u32 %v5973_v46, %v5972_v37  ;;  %v3749_v7 = vor.u32 %v5975_v54, %v5974_v26  ;;  %v5976_v32 = vld [vmem:[#allocation29_spill] sm:$0xff]  ;;  %v5977_v10 = vld [vmem:[#allocation27_spill] sm:$0xff]  ;;  %v5978_v38 = vld [vmem:[#allocation16_spill] sm:$0xff] }
 0x3ae   : > { %v3781_v40 = vor.u32 %v5977_v10, %v5976_v32  ;;  %v5979_v45 = vld [vmem:[#allocation18_spill] sm:$0xff]  ;;  %v5980_v19 = vld [vmem:[#allocation32_spill] sm:$0xff]  ;;  %v5982_v41 = vld [vmem:[#allocation17_spill] sm:$0xff] }
 0x3af   : > { %v3753_v50 = vor.u32 %v5979_v45, %v5978_v38  ;;  %v5981_v17 = vld [vmem:[#allocation34_spill] sm:$0xff]  ;;  %v5983_v1 = vld [vmem:[#allocation15_spill] sm:$0xff]  ;;  %v5984_v63 = vld [vmem:[#allocation33_spill] sm:$0xff] }
 0x3b0   : > { %2863 = vmatpush.bf16.msra.mxu0 %v4046_v34  ;;  %4124 = vmatpush.bf16.msra.mxu2 %v4046_v34  ;;  %v3785_v13 = vor.u32 %v5981_v17, %v5980_v19  ;;  %v3757_v35 = vor.u32 %v5983_v1, %v5982_v41  ;;  %v5985_v11 = vld [vmem:[#allocation31_spill] sm:$0xff]  ;;  %v5986_v44 = vld [vmem:[#allocation20_spill] sm:$0xff]  ;;  %v5987_v49 = vld [vmem:[#allocation22_spill] sm:$0xff] }
 0x3b1   : > { %2912 = vmatpush.bf16.msra.mxu1 %v4054_v59  ;;  %4132 = vmatpush.bf16.msra.mxu3 %v4054_v59  ;;  %v3789_v2 = vor.u32 %v5985_v11, %v5984_v63  ;;  %v3761_v0 = vor.u32 %v5987_v49, %v5986_v44  ;;  %v5988_v39 = vld [vmem:[#allocation36_spill] sm:$0xff]  ;;  %v5989_v14 = vld [vmem:[#allocation38_spill] sm:$0xff]  ;;  %v5990_v23 = vld [vmem:[#allocation21_spill] sm:$0xff] }
 0x3b2   : > { %v3793_v9 = vor.u32 %v5989_v14, %v5988_v39  ;;  %v5991_v34 = vld [vmem:[#allocation19_spill] sm:$0xff]  ;;  %v5995_v14 = vld [vmem:[#allocation40_spill] sm:$0xff] }
 0x3b3   : > { %v3765_v59 = vor.u32 %v5991_v34, %v5990_v23  ;;  %v5994_v1 = vld [vmem:[#allocation39_spill] sm:$0xff] }
 0x3b4   : > { %2864 = vmatpush.bf16.msra.mxu0 %v4045_v27  ;;  %4125 = vmatpush.bf16.msra.mxu2 %v4045_v27  ;;  %v5992_v27 = vld [vmem:[#allocation37_spill] sm:$0xff] }
 0x3b5   : > { %2913 = vmatpush.bf16.msra.mxu1 %v4053_v36  ;;  %4133 = vmatpush.bf16.msra.mxu3 %v4053_v36  ;;  %v5993_v36 = vld [vmem:[#allocation35_spill] sm:$0xff] }
 0x3b8   : > { %2865 = vmatpush.bf16.msra.mxu0 %v4044_v58  ;;  %4126 = vmatpush.bf16.msra.mxu2 %v4044_v58  ;;  %v3797_v58 = vor.u32 %v5993_v36, %v5992_v27 }
 0x3b9   : > { %2914 = vmatpush.bf16.msra.mxu1 %v4052_v4  ;;  %4134 = vmatpush.bf16.msra.mxu3 %v4052_v4 }
 0x3bc   : > { %2866 = vmatpush.bf16.msra.mxu0 %v4043_v42  ;;  %4127 = vmatpush.bf16.msra.mxu2 %v4043_v42 }
 0x3bd   : > { %2915 = vmatpush.bf16.msra.mxu1 %v4051_v3  ;;  %4135 = vmatpush.bf16.msra.mxu3 %v4051_v3 }
 0x3c0   : > { %2867 = vmatpush.bf16.msra.mxu0 %v4042_v8  ;;  %4128 = vmatpush.bf16.msra.mxu2 %v4042_v8  ;;  %v5842_v8 = vld [vmem:[%s5912_s5] ss:$0 sm:$0xff] }
 0x3c1   : > { %2916 = vmatpush.bf16.msra.mxu1 %v4050_v31  ;;  %4136 = vmatpush.bf16.msra.mxu3 %v4050_v31 }
 0x3c3   : > { %2868 = vmatmul.bf16.vlgmr.msra.gmra.mxu0 %v3737_v52  ;;  %2888 = vmatmul.bf16.vlgmr.msra.gmra.mxu2 %v3769_v5 }
 0x3c4   : > { %2917 = vmatmul.bf16.vlgmr.msra.gmra.mxu1 %v3741_v53  ;;  %2937 = vmatmul.bf16.vlgmr.msra.gmra.mxu3 %v3773_v51 }
 0x3d3   : > { %2873 = vmatmul.bf16.gmra.mxu0 %v3745_v33  ;;  %2893 = vmatmul.bf16.gmra.mxu2 %v3777_v15 }
 0x3d4   : > { %2922 = vmatmul.bf16.gmra.mxu1 %v3749_v7  ;;  %2942 = vmatmul.bf16.gmra.mxu3 %v3781_v40 }
 0x3e3   : > { %2878 = vmatmul.bf16.gmra.mxu0 %v3753_v50  ;;  %2898 = vmatmul.bf16.gmra.mxu2 %v3785_v13 }
 0x3e4   : > { %2927 = vmatmul.bf16.gmra.mxu1 %v3757_v35  ;;  %2947 = vmatmul.bf16.gmra.mxu3 %v3789_v2 }
 0x3f3   : > { %2883 = vmatmul.bf16.gmra.mxu0 %v3761_v0  ;;  %2903 = vmatmul.bf16.gmra.mxu2 %v3793_v9 }
 0x3f4   : > { %2932 = vmatmul.bf16.gmra.mxu1 %v3765_v59  ;;  %2952 = vmatmul.bf16.gmra.mxu3 %v3797_v58 }
 0x440   : > { %v2869_v4 = vpop.f32.mrf.mxu0 }
 0x441   : > { %v2918_v42 = vpop.f32.mrf.mxu1 }
 0x442   : > { %v2919_v3 = vadd.f32 %v2918_v42, %v2869_v4 }
 0x444   : > { %v2958_v31 = vmul.f32 %v2919_v3, %v4596_v56  ;;  %v5996_v3 = vld [vmem:[#allocation41_spill] sm:$0xff] }
 0x446   : > { %v2978_v18 = vadd.f32 %v5842_v8, %v2958_v31  ;;  %v2889_v21 = vpop.f32.mrf.mxu2 }
 0x447   : > { %v2938_v52 = vpop.f32.mrf.mxu3 }
 0x448   : > { %2994 = vst [vmem:[%s4298_s13] sm:$0xff] %v2978_v18  ;;  %v2939_v12 = vadd.f32 %v2938_v52, %v2889_v21  ;;  %v2871_v30 = vpop.f32.mrf.mxu0 }
 0x449   : > { %v2920_v5 = vpop.f32.mrf.mxu1 }
 0x44a   : > { %v2966_v6 = vmul.f32 %v2939_v12, %v4612_v29  ;;  %v2921_v22 = vadd.f32 %v2920_v5, %v2871_v30 }
 0x44c   : > { %v2986_v53 = vadd.f32 %v5842_v8, %v2966_v6  ;;  %v2959_v43 = vmul.f32 %v2921_v22, %v4598_v24 }
 0x44e   : > { %3002 = vst [vmem:[%s4298_s13 + $0x40] sm:$0xff] %v2986_v53  ;;  %v2979_v56 = vadd.f32 %v5842_v8, %v2959_v43  ;;  %v2891_v55 = vpop.f32.mrf.mxu2  ;;  %v5997_v53 = vld [vmem:[#allocation42_spill] sm:$0xff] }
 0x44f   : > { %v2940_v51 = vpop.f32.mrf.mxu3 }
 0x450   : > { %2995 = vst [vmem:[%s4298_s13 + $0x8] sm:$0xff] %v2979_v56  ;;  %v2941_v47 = vadd.f32 %v2940_v51, %v2891_v55  ;;  %v2874_v62 = vpop.f32.mrf.mxu0 }
 0x451   : > { %v2923_v33 = vpop.f32.mrf.mxu1 }
 0x452   : > { %v2967_v37 = vmul.f32 %v2941_v47, %v4614_v20  ;;  %v2924_v29 = vadd.f32 %v2923_v33, %v2874_v62 }
 0x454   : > { %v2987_v46 = vadd.f32 %v5842_v8, %v2967_v37  ;;  %v2960_v15 = vmul.f32 %v2924_v29, %v4600_v60  ;;  %v5998_v37 = vld [vmem:[#allocation43_spill] sm:$0xff] }
 0x456   : > { %3003 = vst [vmem:[%s4298_s13 + $0x48] sm:$0xff] %v2987_v46  ;;  %v2980_v24 = vadd.f32 %v5842_v8, %v2960_v15  ;;  %v2894_v26 = vpop.f32.mrf.mxu2 }
 0x457   : > { %v2943_v54 = vpop.f32.mrf.mxu3 }
 0x458   : > { %2996 = vst [vmem:[%s4298_s13 + $0x10] sm:$0xff] %v2980_v24  ;;  %v2944_v7 = vadd.f32 %v2943_v54, %v2894_v26  ;;  %v2876_v32 = vpop.f32.mrf.mxu0 }
 0x459   : > { %v2925_v10 = vpop.f32.mrf.mxu1 }
 0x45a   : > { %v2968_v40 = vmul.f32 %v2944_v7, %v4616_v48  ;;  %v2926_v20 = vadd.f32 %v2925_v10, %v2876_v32 }
 0x45c   : > { %v2988_v38 = vadd.f32 %v5842_v8, %v2968_v40  ;;  %v2961_v45 = vmul.f32 %v2926_v20, %v4602_v61 }
 0x45e   : > { %3004 = vst [vmem:[%s4298_s13 + $0x50] sm:$0xff] %v2988_v38  ;;  %v2981_v60 = vadd.f32 %v5842_v8, %v2961_v45  ;;  %v2896_v50 = vpop.f32.mrf.mxu2 }
 0x45f   : > { %v2945_v19 = vpop.f32.mrf.mxu3 }
 0x460   : > { %2997 = vst [vmem:[%s4298_s13 + $0x18] sm:$0xff] %v2981_v60  ;;  %v2946_v17 = vadd.f32 %v2945_v19, %v2896_v50  ;;  %v2879_v13 = vpop.f32.mrf.mxu0 }
 0x461   : > { %v2928_v41 = vpop.f32.mrf.mxu1 }
 0x462   : > { %v2969_v35 = vmul.f32 %v2946_v17, %v5994_v1  ;;  %v2929_v48 = vadd.f32 %v2928_v41, %v2879_v13 }
 0x464   : > { %v2989_v63 = vadd.f32 %v5842_v8, %v2969_v35  ;;  %v2962_v11 = vmul.f32 %v2929_v48, %v4604_v25 }
 0x466   : > { %3005 = vst [vmem:[%s4298_s13 + $0x58] sm:$0xff] %v2989_v63  ;;  %v2982_v61 = vadd.f32 %v5842_v8, %v2962_v11  ;;  %v2899_v2 = vpop.f32.mrf.mxu2 }
 0x467   : > { %v2948_v44 = vpop.f32.mrf.mxu3 }
 0x468   : > { %2998 = vst [vmem:[%s4298_s13 + $0x20] sm:$0xff] %v2982_v61  ;;  %v2949_v49 = vadd.f32 %v2948_v44, %v2899_v2  ;;  %v2881_v0 = vpop.f32.mrf.mxu0 }
 0x469   : > { %v2930_v39 = vpop.f32.mrf.mxu1 }
 0x46a   : > { %v2970_v9 = vmul.f32 %v2949_v49, %v5995_v14  ;;  %v2931_v23 = vadd.f32 %v2930_v39, %v2881_v0 }
 0x46c   : > { %v2990_v34 = vadd.f32 %v5842_v8, %v2970_v9  ;;  %v2963_v59 = vmul.f32 %v2931_v23, %v4606_v57 }
 0x46e   : > { %3006 = vst [vmem:[%s4298_s13 + $0x60] sm:$0xff] %v2990_v34  ;;  %v2983_v25 = vadd.f32 %v5842_v8, %v2963_v59  ;;  %v2901_v27 = vpop.f32.mrf.mxu2 }
 0x46f   : > { %v2950_v36 = vpop.f32.mrf.mxu3 }
 0x470   : > { %2999 = vst [vmem:[%s4298_s13 + $0x28] sm:$0xff] %v2983_v25  ;;  %v2951_v58 = vadd.f32 %v2950_v36, %v2901_v27  ;;  %v2884_v4 = vpop.f32.mrf.mxu0 }
 0x471   : > { %v2933_v42 = vpop.f32.mrf.mxu1 }
 0x472   : > { %v2971_v31 = vmul.f32 %v2951_v58, %v5996_v3  ;;  %v2934_v18 = vadd.f32 %v2933_v42, %v2884_v4 }
 0x474   : > { %v2991_v21 = vadd.f32 %v5842_v8, %v2971_v31  ;;  %v2964_v52 = vmul.f32 %v2934_v18, %v4608_v16 }
 0x476   : > { %3007 = vst [vmem:[%s4298_s13 + $0x68] sm:$0xff] %v2991_v21  ;;  %v2984_v57 = vadd.f32 %v5842_v8, %v2964_v52  ;;  %v2904_v12 = vpop.f32.mrf.mxu2 }
 0x477   : > { %v2953_v30 = vpop.f32.mrf.mxu3 }
 0x478   : > { %3000 = vst [vmem:[%s4298_s13 + $0x30] sm:$0xff] %v2984_v57  ;;  %v2954_v5 = vadd.f32 %v2953_v30, %v2904_v12  ;;  %v2886_v6 = vpop.f32.mrf.mxu0 }
 0x479   : > { %v2935_v22 = vpop.f32.mrf.mxu1 }
 0x47a   : > { %v2972_v43 = vmul.f32 %v2954_v5, %v5997_v53  ;;  %v2936_v56 = vadd.f32 %v2935_v22, %v2886_v6 }
 0x47c   : > { %v2992_v55 = vadd.f32 %v5842_v8, %v2972_v43  ;;  %v2965_v51 = vmul.f32 %v2936_v56, %v4610_v28 }
 0x47e   : > { %3008 = vst [vmem:[%s4298_s13 + $0x70] sm:$0xff] %v2992_v55  ;;  %v2985_v16 = vadd.f32 %v5842_v8, %v2965_v51  ;;  %v2906_v47 = vpop.f32.mrf.mxu2 }
 0x47f   : > { %v2955_v62 = vpop.f32.mrf.mxu3 }
 0x480   : > { %3001 = vst [vmem:[%s4298_s13 + $0x38] sm:$0xff] %v2985_v16  ;;  %v2956_v33 = vadd.f32 %v2955_v62, %v2906_v47 }
 0x482   : > { %v2973_v29 = vmul.f32 %v2956_v33, %v5998_v37 }
 0x484   : > { %v2993_v46 = vadd.f32 %v5842_v8, %v2973_v29 }
 0x486   : > { %3009 = vst [vmem:[%s4298_s13 + $0x78] sm:$0xff] %v2993_v46 }
 0x487 PF: > { %s17_s28 = sadd.s32 1, %s4218_s28   ;;  %s5999_s24 = smov %s4210_s26 }
 0x488   : > { %p14_p11 = scmp.ge.s32.totalorder %s17_s28, 6   ;;  %s6000_s25 = smov %s4214_s27 }
 0x489   : > { %s6001_s26 = smov %s6004_s29  ;;  %s6002_s27 = smov %s6008_s30 }
 0x48a   :  { %16 = sbr.rel (!%p14_p11) target bundleno = 3 (0x3), region = 109 }
 0x48f   :  { %3032 = vsyncmov [#allocation4] }
 0x492   :  { %s3033_s13 = vpop.sfrf %3032 }
 0x493   :  { %p3864_p12 = scmp.ne.s32.totalorder %s3033_s13, 0 }
 0x495   :  { %3037 = shalt.err (%p3864_p12)  }

</bundles_post_ra>
